<compile_context>
chip_gen: v7x
topology: tpu7x:2x2x1
jax: 0.10.0
libtpu: 0.0.40
codegen_flags: <defaults>
</compile_context>

<pallas_src>
import functools

import jax
import jax.numpy as jnp
from jax.experimental import pallas as pl
from jax.experimental.pallas import tpu as pltpu

_BN_EPS = 1e-5
_LANE = 128

# Fallback-matmul tile targets.  Worst-case footprint with double buffering:
# 2*(512*1024 + 1024*512)*2B (A/B bf16) + 2*512*512*2B (bf16 out) + 512*512*4B
# (f32 acc) ~= 5.5 MiB, well under the 48 MiB limit on every generation.
_TM = 512
_TN = 512
_TK = 1024
_VMEM_LIMIT = 48 * 1024 * 1024           # <= v7x cap (64 MiB physical)
_FUSED_VMEM_BUDGET = 20 * 1024 * 1024    # per-image working-set cap, fused path


def _round_up(x, m):
    return (x + m - 1) // m * m


def _pick_tn(cout_p):
    """Largest N tile (multiple of 128) <= _TN that divides cout_p."""
    if cout_p <= _TN:
        return cout_p
    for t in (_TN, 256, _LANE):
        if cout_p % t == 0:
            return t
    return _LANE


# ---------------------------------------------------------------------------
# Fused conv path (stride == 1): in-kernel tap gather, no patch matrix.
# ---------------------------------------------------------------------------
def _fused_conv_kernel(x_ref, w_ref, b_ref, o_ref, *, kh, kw, wp, m_img):
    # x_ref: (1, hp*wp + kw-1, cin) f32   whole padded image, flattened
    # w_ref: (kh*kw, cin, tn)       bf16  BN scale already folded in
    # b_ref: (1, tn)                f32   folded BN bias
    # o_ref: (1, m_img, tn)         bf16  m_img = ho*wp (junk cols sliced later)
    acc = jnp.zeros(o_ref.shape[1:], jnp.float32)
    for t in range(kh * kw):
        i, j = divmod(t, kw)
        off = i * wp + j                      # static tap offset into flat image
        a = x_ref[0, off:off + m_img, :].astype(jnp.bfloat16)
        acc = acc + jnp.dot(a, w_ref[t], preferred_element_type=jnp.float32)
    o_ref[0] = jnp.maximum(acc + b_ref[...], 0.0).astype(o_ref.dtype)


def _conv_fused(x_pad, w_taps, bias, *, kh, kw, ho):
    n, hp, wp, cin = x_pad.shape
    cout_p = w_taps.shape[-1]
    m_img = ho * wp
    flat = x_pad.reshape(n, hp * wp, cin)
    if kw > 1:
        # guard rows so every tap-window slice stays in bounds
        flat = jnp.pad(flat, ((0, 0), (0, kw - 1), (0, 0)))
    flat_len = hp * wp + kw - 1
    tn = _pick_tn(cout_p)
    # keep >= 2 parallel blocks so v7x's second TensorCore is used
    if n * (cout_p // tn) == 1 and tn % 256 == 0:
        tn //= 2
    grid = (n, cout_p // tn)
    kernel = functools.partial(
        _fused_conv_kernel, kh=kh, kw=kw, wp=wp, m_img=m_img)
    return pl.pallas_call(
        kernel,
        out_shape=jax.ShapeDtypeStruct((n, m_img, cout_p), jnp.bfloat16),
        grid_spec=pltpu.PrefetchScalarGridSpec(
            num_scalar_prefetch=0,
            grid=grid,
            in_specs=[
                # image block index ignores the cout axis -> stays resident
                pl.BlockSpec((1, flat_len, cin), lambda b, c: (b, 0, 0)),
                pl.BlockSpec((kh * kw, cin, tn), lambda b, c: (0, 0, c)),
                pl.BlockSpec((1, tn), lambda b, c: (0, c)),
            ],
            out_specs=pl.BlockSpec((1, m_img, tn), lambda b, c: (b, 0, c)),
        ),
        compiler_params=pltpu.CompilerParams(
            dimension_semantics=("parallel", "parallel"),
            vmem_limit_bytes=_VMEM_LIMIT,
        ),
    )(flat, w_taps, bias)


# ---------------------------------------------------------------------------
# General fallback (any stride): XLA im2col (bf16) + tiled Pallas matmul.
# ---------------------------------------------------------------------------
def _mm_bias_relu_kernel(a_ref, w_ref, b_ref, o_ref):
    # Single-K-step fast path: no accumulator scratch, no pl.when branches.
    o_ref[...] = jnp.maximum(
        jnp.dot(a_ref[...], w_ref[...], preferred_element_type=jnp.float32)
        + b_ref[...],
        0.0,
    ).astype(o_ref.dtype)


def _mm_bias_relu_acc_kernel(a_ref, w_ref, b_ref, o_ref, acc_ref):
    k = pl.program_id(2)

    @pl.when(k == 0)
    def _():
        acc_ref[...] = jnp.zeros_like(acc_ref)

    acc_ref[...] += jnp.dot(
        a_ref[...], w_ref[...], preferred_element_type=jnp.float32)

    @pl.when(k == pl.num_programs(2) - 1)
    def _():
        o_ref[...] = jnp.maximum(acc_ref[...] + b_ref[...], 0.0
                                 ).astype(o_ref.dtype)


def _matmul_bias_relu(a, w2d, bias):
    # a: (m, k) bf16; w2d: (kp0, cout_p) bf16 (K padded to 128); bias: (1, cout_p)
    m, k = a.shape
    kp0, cout_p = w2d.shape
    tn = _pick_tn(cout_p)
    if kp0 <= _TK:
        tk, kp = kp0, kp0
    else:
        tk = 512
        kp = _round_up(kp0, tk)
    mp = _round_up(m, 256)
    tm = _TM if mp % _TM == 0 else 256
    if (mp // tm) * (cout_p // tn) == 1:
        tm //= 2                              # >= 2 parallel blocks for v7x
    a = jnp.pad(a, ((0, mp - m), (0, kp - k)))
    if kp != kp0:
        w2d = jnp.pad(w2d, ((0, kp - kp0), (0, 0)))
    out_shape = jax.ShapeDtypeStruct((mp, cout_p), jnp.bfloat16)

    if kp == tk:
        # Single K step: 2-D fully-parallel grid, write output directly.
        return pl.pallas_call(
            _mm_bias_relu_kernel,
            out_shape=out_shape,
            grid_spec=pltpu.PrefetchScalarGridSpec(
                num_scalar_prefetch=0,
                grid=(mp // tm, cout_p // tn),
                in_specs=[
                    pl.BlockSpec((tm, tk), lambda i, j: (i, 0)),
                    pl.BlockSpec((tk, tn), lambda i, j: (0, j)),
                    pl.BlockSpec((1, tn), lambda i, j: (0, j)),
                ],
                out_specs=pl.BlockSpec((tm, tn), lambda i, j: (i, j)),
            ),
            compiler_params=pltpu.CompilerParams(
                dimension_semantics=("parallel", "parallel"),
                vmem_limit_bytes=_VMEM_LIMIT,
            ),
        )(a, w2d, bias)

    return pl.pallas_call(
        _mm_bias_relu_acc_kernel,
        out_shape=out_shape,
        grid_spec=pltpu.PrefetchScalarGridSpec(
            num_scalar_prefetch=0,
            grid=(mp // tm, cout_p // tn, kp // tk),
            in_specs=[
                pl.BlockSpec((tm, tk), lambda i, j, kk: (i, kk)),
                pl.BlockSpec((tk, tn), lambda i, j, kk: (kk, j)),
                pl.BlockSpec((1, tn), lambda i, j, kk: (0, j)),
            ],
            out_specs=pl.BlockSpec((tm, tn), lambda i, j, kk: (i, j)),
            scratch_shapes=[pltpu.VMEM((tm, tn), jnp.float32)],
        ),
        compiler_params=pltpu.CompilerParams(
            dimension_semantics=("parallel", "parallel", "arbitrary"),
            vmem_limit_bytes=_VMEM_LIMIT,
        ),
    )(a, w2d, bias)


def _im2col(x_pad, kh, kw, stride):
    n, hp, wp, c = x_pad.shape
    ho = (hp - kh) // stride + 1
    wo = (wp - kw) // stride + 1
    taps = []
    for i in range(kh):
        for j in range(kw):
            taps.append(
                x_pad[:, i:i + stride * (ho - 1) + 1:stride,
                      j:j + stride * (wo - 1) + 1:stride, :])
    patches = jnp.concatenate(taps, axis=-1)  # (n, ho, wo, kh*kw*c), tap-major
    return patches.reshape(n * ho * wo, kh * kw * c)


# ---------------------------------------------------------------------------
# One-time parameter folding and the forward wrapper
# ---------------------------------------------------------------------------
def fold_conv_bn_params(p):
    """One-time fold: BN scale into bf16 weights, conv bias + BN shift into bias."""
    cout, cin, kh, kw = p["w"].shape
    cout_p = _round_up(cout, _LANE)
    scale = p["gamma"] / jnp.sqrt(p["var"] + _BN_EPS)        # (cout,)
    bias = p["beta"] + scale * (p["b"] - p["mean"])          # (cout,)
    # (KH, KW, Cin, Cout), scale folded into columns in f32 before bf16 cast.
    w = jnp.transpose(p["w"], (2, 3, 1, 0)) * scale
    w = jnp.pad(w, ((0, 0), (0, 0), (0, 0), (0, cout_p - cout)))
    w_taps = w.reshape(kh * kw, cin, cout_p).astype(jnp.bfloat16)
    k = kh * kw * cin
    kp0 = _round_up(k, _LANE)
    w2d = jnp.pad(w.reshape(k, cout_p),
                  ((0, kp0 - k), (0, 0))).astype(jnp.bfloat16)
    bias = jnp.pad(bias, (0, cout_p - cout)).reshape(1, cout_p).astype(jnp.float32)
    return dict(w_taps=w_taps, w2d=w2d, bias=bias)


@functools.partial(
    jax.jit,
    static_argnames=("kernel_size", "stride", "padding", "out_channels"),
)
def convolution_block(x_nchw, folded, *, kernel_size, stride, padding, out_channels):
    kh = kw = kernel_size
    n, cin, h, w = x_nchw.shape
    hp, wp = h + 2 * padding, w + 2 * padding
    ho = (hp - kh) // stride + 1
    wo = (wp - kw) // stride + 1
    cout_p = folded["bias"].shape[1]

    x = jnp.transpose(x_nchw, (0, 2, 3, 1))  # NCHW -> NHWC
    # TODO(synk): keeping NHWC end-to-end (dropping both layout transposes)
    # requires the surrounding network to adopt NHWC; out of scope here.

    use_fused = stride == 1
    if use_fused:
        tn_est = min(_TN, cout_p)
        m_img = ho * wp
        est = (2 * (hp * wp + kw - 1) * cin * 4   # f32 image, double-buffered
               + 2 * kh * kw * cin * tn_est * 2   # bf16 weights
               + 2 * m_img * tn_est * 2           # bf16 output, double-buffered
               + m_img * tn_est * 4               # f32 accumulator
               + m_img * cin * 4)                 # tap-window staging
        use_fused = est <= _FUSED_VMEM_BUDGET

    if use_fused:
        xp = x
        if padding > 0:
            xp = jnp.pad(
                xp, ((0, 0), (padding, padding), (padding, padding), (0, 0)))
        out_flat = _conv_fused(xp, folded["w_taps"], folded["bias"],
                               kh=kh, kw=kw, ho=ho)
        out = out_flat.reshape(n, ho, wp, cout_p)[:, :, :wo, :out_channels]
    else:
        xp = x.astype(jnp.bfloat16)               # cast BEFORE pad / im2col
        if padding > 0:
            xp = jnp.pad(
                xp, ((0, 0), (padding, padding), (padding, padding), (0, 0)))
        a = _im2col(xp, kh, kw, stride)
        out2d = _matmul_bias_relu(a, folded["w2d"], folded["bias"])
        out = out2d[:n * ho * wo, :out_channels].reshape(n, ho, wo, out_channels)

    return jnp.transpose(out, (0, 3, 1, 2)).astype(jnp.float32)  # back to NCHW


# ---------------------------------------------------------------------------
# Pure-JAX reference (f32) and deterministic parameter init
# ---------------------------------------------------------------------------
def convolution_block_ref(x_nchw, p, *, stride, padding):
    x = jnp.transpose(x_nchw, (0, 2, 3, 1))
    w_hwio = jnp.transpose(p["w"], (2, 3, 1, 0))
    y = jax.lax.conv_general_dilated(
        x, w_hwio, (stride, stride),
        [(padding, padding), (padding, padding)],
        dimension_numbers=("NHWC", "HWIO", "NHWC"))
    y = y + p["b"]
    y = p["gamma"] * (y - p["mean"]) / jnp.sqrt(p["var"] + _BN_EPS) + p["beta"]
    y = jnp.maximum(y, 0.0)
    return jnp.transpose(y, (0, 3, 1, 2))


def init_params(key, cin, cout, k):
    k1, k2, k3, k4, k5, k6 = jax.random.split(key, 6)
    return dict(
        w=jax.random.normal(k1, (cout, cin, k, k), jnp.float32) * 0.1,
        b=jax.random.normal(k2, (cout,), jnp.float32) * 0.1,
        gamma=jax.random.uniform(k3, (cout,), jnp.float32, 0.5, 1.5),
        beta=jax.random.normal(k4, (cout,), jnp.float32) * 0.1,
        mean=jax.random.normal(k5, (cout,), jnp.float32) * 0.1,
        var=jax.random.uniform(k6, (cout,), jnp.float32, 0.5, 1.5),
    )


if __name__ == "__main__":
    key = jax.random.PRNGKey(0)
    kx, kparam = jax.random.split(key)

    batch, in_channels, out_channels = 2, 4, 16
    kernel_size, padding = 3, 1
    hw = 16

    x = jax.random.normal(kx, (batch, in_channels, hw, hw), jnp.float32)
    params = init_params(kparam, in_channels, out_channels, kernel_size)
    folded = fold_conv_bn_params(params)  # one-time fold (not per forward)

    # stride = 1 -> fused in-kernel tap-gather path
    out = convolution_block(x, folded, kernel_size=kernel_size, stride=1,
                            padding=padding, out_channels=out_channels)
    out = jax.block_until_ready(out)
    ref = jax.block_until_ready(
        convolution_block_ref(x, params, stride=1, padding=padding))
    assert out.shape == (batch, out_channels, hw, hw), out.shape
    err = float(jnp.max(jnp.abs(out - ref)))
    assert jnp.allclose(out, ref, atol=2e-2, rtol=2e-2), err

    # stride = 2 -> general im2col + tiled-matmul fallback path
    out2 = convolution_block(x, folded, kernel_size=kernel_size, stride=2,
                             padding=padding, out_channels=out_channels)
    out2 = jax.block_until_ready(out2)
    ref2 = jax.block_until_ready(
        convolution_block_ref(x, params, stride=2, padding=padding))
    assert out2.shape == ref2.shape, (out2.shape, ref2.shape)
    err2 = float(jnp.max(jnp.abs(out2 - ref2)))
    assert jnp.allclose(out2, ref2, atol=2e-2, rtol=2e-2), err2

    print("KERNEL_OK")
</pallas_src>

<mosaic_0001>
module attributes {stable_mosaic.version = 11 : i64} {
  func.func @_fused_conv_kernel(%arg0: i32, %arg1: i32, %arg2: memref<1x326x4xf32, #tpu.memory_space<vmem>>, %arg3: memref<9x4x128xbf16, #tpu.memory_space<vmem>>, %arg4: memref<1x128xf32, #tpu.memory_space<vmem>>, %arg5: memref<1x288x128xbf16, #tpu.memory_space<vmem>>) attributes {dimension_semantics = [#tpu.dimension_semantics<parallel>, #tpu.dimension_semantics<parallel>], iteration_bounds = array<i64: 2, 1>, scalar_prefetch = 0 : i64, scratch_operands = 0 : i64, tpu.core_type = #tpu.core_type<tc>, window_params = [{transform_indices = @transform_0, window_bounds = array<i64: 1, 326, 4>}, {transform_indices = @transform_1, window_bounds = array<i64: 9, 4, 128>}, {transform_indices = @transform_2, window_bounds = array<i64: 1, 128>}, {transform_indices = @transform_3, window_bounds = array<i64: 1, 288, 128>}]} {
    %cst = arith.constant 0.000000e+00 : f32
    %0 = vector.broadcast %cst : f32 to vector<288x128xf32>
    %c0 = arith.constant 0 : index
    %c0_0 = arith.constant 0 : index
    %c0_1 = arith.constant 0 : index
    %1 = vector.load %arg2[%c0, %c0_0, %c0_1] : memref<1x326x4xf32, #tpu.memory_space<vmem>>, vector<1x288x4xf32>
    %2 = vector.shape_cast %1 : vector<1x288x4xf32> to vector<288x4xf32>
    %3 = arith.truncf %2 : vector<288x4xf32> to vector<288x4xbf16>
    %c0_2 = arith.constant 0 : index
    %c0_3 = arith.constant 0 : index
    %c0_4 = arith.constant 0 : index
    %4 = vector.load %arg3[%c0_2, %c0_3, %c0_4] : memref<9x4x128xbf16, #tpu.memory_space<vmem>>, vector<1x4x128xbf16>
    %5 = vector.shape_cast %4 : vector<1x4x128xbf16> to vector<4x128xbf16>
    %cst_5 = arith.constant dense<0.000000e+00> : vector<288x128xf32>
    %6 = tpu.matmul %3, %5, %cst_5 {dimension_numbers = #tpu.dot_dimension_numbers<[1], [0], [0], [1], [0, 0, 1, 1], [], []>} : vector<288x4xbf16>, vector<4x128xbf16>, vector<288x128xf32> -> vector<288x128xf32>
    %7 = arith.addf %0, %6 : vector<288x128xf32>
    %c0_6 = arith.constant 0 : index
    %c1 = arith.constant 1 : index
    %c0_7 = arith.constant 0 : index
    %8 = vector.load %arg2[%c0_6, %c1, %c0_7] : memref<1x326x4xf32, #tpu.memory_space<vmem>>, vector<1x288x4xf32>
    %9 = vector.shape_cast %8 : vector<1x288x4xf32> to vector<288x4xf32>
    %10 = arith.truncf %9 : vector<288x4xf32> to vector<288x4xbf16>
    %c1_8 = arith.constant 1 : index
    %c0_9 = arith.constant 0 : index
    %c0_10 = arith.constant 0 : index
    %11 = vector.load %arg3[%c1_8, %c0_9, %c0_10] : memref<9x4x128xbf16, #tpu.memory_space<vmem>>, vector<1x4x128xbf16>
    %12 = vector.shape_cast %11 : vector<1x4x128xbf16> to vector<4x128xbf16>
    %cst_11 = arith.constant dense<0.000000e+00> : vector<288x128xf32>
    %13 = tpu.matmul %10, %12, %cst_11 {dimension_numbers = #tpu.dot_dimension_numbers<[1], [0], [0], [1], [0, 0, 1, 1], [], []>} : vector<288x4xbf16>, vector<4x128xbf16>, vector<288x128xf32> -> vector<288x128xf32>
    %14 = arith.addf %7, %13 : vector<288x128xf32>
    %c0_12 = arith.constant 0 : index
    %c2 = arith.constant 2 : index
    %c0_13 = arith.constant 0 : index
    %15 = vector.load %arg2[%c0_12, %c2, %c0_13] : memref<1x326x4xf32, #tpu.memory_space<vmem>>, vector<1x288x4xf32>
    %16 = vector.shape_cast %15 : vector<1x288x4xf32> to vector<288x4xf32>
    %17 = arith.truncf %16 : vector<288x4xf32> to vector<288x4xbf16>
    %c2_14 = arith.constant 2 : index
    %c0_15 = arith.constant 0 : index
    %c0_16 = arith.constant 0 : index
    %18 = vector.load %arg3[%c2_14, %c0_15, %c0_16] : memref<9x4x128xbf16, #tpu.memory_space<vmem>>, vector<1x4x128xbf16>
    %19 = vector.shape_cast %18 : vector<1x4x128xbf16> to vector<4x128xbf16>
    %cst_17 = arith.constant dense<0.000000e+00> : vector<288x128xf32>
    %20 = tpu.matmul %17, %19, %cst_17 {dimension_numbers = #tpu.dot_dimension_numbers<[1], [0], [0], [1], [0, 0, 1, 1], [], []>} : vector<288x4xbf16>, vector<4x128xbf16>, vector<288x128xf32> -> vector<288x128xf32>
    %21 = arith.addf %14, %20 : vector<288x128xf32>
    %c0_18 = arith.constant 0 : index
    %c18 = arith.constant 18 : index
    %c0_19 = arith.constant 0 : index
    %22 = vector.load %arg2[%c0_18, %c18, %c0_19] : memref<1x326x4xf32, #tpu.memory_space<vmem>>, vector<1x288x4xf32>
    %23 = vector.shape_cast %22 : vector<1x288x4xf32> to vector<288x4xf32>
    %24 = arith.truncf %23 : vector<288x4xf32> to vector<288x4xbf16>
    %c3 = arith.constant 3 : index
    %c0_20 = arith.constant 0 : index
    %c0_21 = arith.constant 0 : index
    %25 = vector.load %arg3[%c3, %c0_20, %c0_21] : memref<9x4x128xbf16, #tpu.memory_space<vmem>>, vector<1x4x128xbf16>
    %26 = vector.shape_cast %25 : vector<1x4x128xbf16> to vector<4x128xbf16>
    %cst_22 = arith.constant dense<0.000000e+00> : vector<288x128xf32>
    %27 = tpu.matmul %24, %26, %cst_22 {dimension_numbers = #tpu.dot_dimension_numbers<[1], [0], [0], [1], [0, 0, 1, 1], [], []>} : vector<288x4xbf16>, vector<4x128xbf16>, vector<288x128xf32> -> vector<288x128xf32>
    %28 = arith.addf %21, %27 : vector<288x128xf32>
    %c0_23 = arith.constant 0 : index
    %c19 = arith.constant 19 : index
    %c0_24 = arith.constant 0 : index
    %29 = vector.load %arg2[%c0_23, %c19, %c0_24] : memref<1x326x4xf32, #tpu.memory_space<vmem>>, vector<1x288x4xf32>
    %30 = vector.shape_cast %29 : vector<1x288x4xf32> to vector<288x4xf32>
    %31 = arith.truncf %30 : vector<288x4xf32> to vector<288x4xbf16>
    %c4 = arith.constant 4 : index
    %c0_25 = arith.constant 0 : index
    %c0_26 = arith.constant 0 : index
    %32 = vector.load %arg3[%c4, %c0_25, %c0_26] : memref<9x4x128xbf16, #tpu.memory_space<vmem>>, vector<1x4x128xbf16>
    %33 = vector.shape_cast %32 : vector<1x4x128xbf16> to vector<4x128xbf16>
    %cst_27 = arith.constant dense<0.000000e+00> : vector<288x128xf32>
    %34 = tpu.matmul %31, %33, %cst_27 {dimension_numbers = #tpu.dot_dimension_numbers<[1], [0], [0], [1], [0, 0, 1, 1], [], []>} : vector<288x4xbf16>, vector<4x128xbf16>, vector<288x128xf32> -> vector<288x128xf32>
    %35 = arith.addf %28, %34 : vector<288x128xf32>
    %c0_28 = arith.constant 0 : index
    %c20 = arith.constant 20 : index
    %c0_29 = arith.constant 0 : index
    %36 = vector.load %arg2[%c0_28, %c20, %c0_29] : memref<1x326x4xf32, #tpu.memory_space<vmem>>, vector<1x288x4xf32>
    %37 = vector.shape_cast %36 : vector<1x288x4xf32> to vector<288x4xf32>
    %38 = arith.truncf %37 : vector<288x4xf32> to vector<288x4xbf16>
    %c5 = arith.constant 5 : index
    %c0_30 = arith.constant 0 : index
    %c0_31 = arith.constant 0 : index
    %39 = vector.load %arg3[%c5, %c0_30, %c0_31] : memref<9x4x128xbf16, #tpu.memory_space<vmem>>, vector<1x4x128xbf16>
    %40 = vector.shape_cast %39 : vector<1x4x128xbf16> to vector<4x128xbf16>
    %cst_32 = arith.constant dense<0.000000e+00> : vector<288x128xf32>
    %41 = tpu.matmul %38, %40, %cst_32 {dimension_numbers = #tpu.dot_dimension_numbers<[1], [0], [0], [1], [0, 0, 1, 1], [], []>} : vector<288x4xbf16>, vector<4x128xbf16>, vector<288x128xf32> -> vector<288x128xf32>
    %42 = arith.addf %35, %41 : vector<288x128xf32>
    %c0_33 = arith.constant 0 : index
    %c36 = arith.constant 36 : index
    %c0_34 = arith.constant 0 : index
    %43 = vector.load %arg2[%c0_33, %c36, %c0_34] : memref<1x326x4xf32, #tpu.memory_space<vmem>>, vector<1x288x4xf32>
    %44 = vector.shape_cast %43 : vector<1x288x4xf32> to vector<288x4xf32>
    %45 = arith.truncf %44 : vector<288x4xf32> to vector<288x4xbf16>
    %c6 = arith.constant 6 : index
    %c0_35 = arith.constant 0 : index
    %c0_36 = arith.constant 0 : index
    %46 = vector.load %arg3[%c6, %c0_35, %c0_36] : memref<9x4x128xbf16, #tpu.memory_space<vmem>>, vector<1x4x128xbf16>
    %47 = vector.shape_cast %46 : vector<1x4x128xbf16> to vector<4x128xbf16>
    %cst_37 = arith.constant dense<0.000000e+00> : vector<288x128xf32>
    %48 = tpu.matmul %45, %47, %cst_37 {dimension_numbers = #tpu.dot_dimension_numbers<[1], [0], [0], [1], [0, 0, 1, 1], [], []>} : vector<288x4xbf16>, vector<4x128xbf16>, vector<288x128xf32> -> vector<288x128xf32>
    %49 = arith.addf %42, %48 : vector<288x128xf32>
    %c0_38 = arith.constant 0 : index
    %c37 = arith.constant 37 : index
    %c0_39 = arith.constant 0 : index
    %50 = vector.load %arg2[%c0_38, %c37, %c0_39] : memref<1x326x4xf32, #tpu.memory_space<vmem>>, vector<1x288x4xf32>
    %51 = vector.shape_cast %50 : vector<1x288x4xf32> to vector<288x4xf32>
    %52 = arith.truncf %51 : vector<288x4xf32> to vector<288x4xbf16>
    %c7 = arith.constant 7 : index
    %c0_40 = arith.constant 0 : index
    %c0_41 = arith.constant 0 : index
    %53 = vector.load %arg3[%c7, %c0_40, %c0_41] : memref<9x4x128xbf16, #tpu.memory_space<vmem>>, vector<1x4x128xbf16>
    %54 = vector.shape_cast %53 : vector<1x4x128xbf16> to vector<4x128xbf16>
    %cst_42 = arith.constant dense<0.000000e+00> : vector<288x128xf32>
    %55 = tpu.matmul %52, %54, %cst_42 {dimension_numbers = #tpu.dot_dimension_numbers<[1], [0], [0], [1], [0, 0, 1, 1], [], []>} : vector<288x4xbf16>, vector<4x128xbf16>, vector<288x128xf32> -> vector<288x128xf32>
    %56 = arith.addf %49, %55 : vector<288x128xf32>
    %c0_43 = arith.constant 0 : index
    %c38 = arith.constant 38 : index
    %c0_44 = arith.constant 0 : index
    %57 = vector.load %arg2[%c0_43, %c38, %c0_44] : memref<1x326x4xf32, #tpu.memory_space<vmem>>, vector<1x288x4xf32>
    %58 = vector.shape_cast %57 : vector<1x288x4xf32> to vector<288x4xf32>
    %59 = arith.truncf %58 : vector<288x4xf32> to vector<288x4xbf16>
    %c8 = arith.constant 8 : index
    %c0_45 = arith.constant 0 : index
    %c0_46 = arith.constant 0 : index
    %60 = vector.load %arg3[%c8, %c0_45, %c0_46] : memref<9x4x128xbf16, #tpu.memory_space<vmem>>, vector<1x4x128xbf16>
    %61 = vector.shape_cast %60 : vector<1x4x128xbf16> to vector<4x128xbf16>
    %cst_47 = arith.constant dense<0.000000e+00> : vector<288x128xf32>
    %62 = tpu.matmul %59, %61, %cst_47 {dimension_numbers = #tpu.dot_dimension_numbers<[1], [0], [0], [1], [0, 0, 1, 1], [], []>} : vector<288x4xbf16>, vector<4x128xbf16>, vector<288x128xf32> -> vector<288x128xf32>
    %63 = arith.addf %56, %62 : vector<288x128xf32>
    %c0_48 = arith.constant 0 : index
    %c0_49 = arith.constant 0 : index
    %64 = vector.load %arg4[%c0_48, %c0_49] : memref<1x128xf32, #tpu.memory_space<vmem>>, vector<1x128xf32>
    %65 = vector.broadcast %64 : vector<1x128xf32> to vector<288x128xf32>
    %66 = arith.addf %63, %65 : vector<288x128xf32>
    %cst_50 = arith.constant 0.000000e+00 : f32
    %67 = vector.broadcast %cst_50 : f32 to vector<288x128xf32>
    %68 = arith.maximumf %66, %67 : vector<288x128xf32>
    %69 = arith.truncf %68 : vector<288x128xf32> to vector<288x128xbf16>
    %c0_51 = arith.constant 0 : index
    %c0_52 = arith.constant 0 : index
    %c0_53 = arith.constant 0 : index
    %70 = vector.load %arg5[%c0_51, %c0_52, %c0_53] : memref<1x288x128xbf16, #tpu.memory_space<vmem>>, vector<1x288x128xbf16>
    %71 = vector.shape_cast %70 : vector<1x288x128xbf16> to vector<288x128xbf16>
    %72 = vector.shape_cast %69 : vector<288x128xbf16> to vector<1x288x128xbf16>
    tpu.vector_store %arg5[%c0_51, %c0_52, %c0_53], %72 {strides = array<i32>} : memref<1x288x128xbf16, #tpu.memory_space<vmem>>, vector<1x288x128xbf16>,
    return
  }
  func.func @transform_0(%arg0: i32, %arg1: i32) -> (i32, i32, i32) {
    %c0_i32 = arith.constant 0 : i32
    %c0_i32_0 = arith.constant 0 : i32
    %c0_i32_1 = arith.constant 0 : i32
    return %arg0, %c0_i32, %c0_i32_0 : i32, i32, i32
  }
  func.func @transform_1(%arg0: i32, %arg1: i32) -> (i32, i32, i32) {
    %c0_i32 = arith.constant 0 : i32
    %c0_i32_0 = arith.constant 0 : i32
    %c0_i32_1 = arith.constant 0 : i32
    return %c0_i32, %c0_i32_0, %arg1 : i32, i32, i32
  }
  func.func @transform_2(%arg0: i32, %arg1: i32) -> (i32, i32) {
    %c0_i32 = arith.constant 0 : i32
    %c0_i32_0 = arith.constant 0 : i32
    return %c0_i32, %arg1 : i32, i32
  }
  func.func @transform_3(%arg0: i32, %arg1: i32) -> (i32, i32, i32) {
    %c0_i32 = arith.constant 0 : i32
    %c0_i32_0 = arith.constant 0 : i32
    return %arg0, %c0_i32, %arg1 : i32, i32, i32
  }
}

</mosaic_0001>

<bundles_post_ra>
// kernel: convolution_block.1
= control target key start
LH: loop header
LB: loop body
LE: loop exit
PB: predicated region body
PF: predicated region fallthrough
CT: control target
= control target key end

     0   :  { %s4694_s12 = smov 0   ;;  %s4696_s13 = smov 0   ;;  %s5447_s0 = inlined_call_operand.vmem [shape: f32[2,326,4], index: 0, kind: input, shape index: {}]   ;;  %s5448_s1 = inlined_call_operand.vmem [shape: bf16[9,4,128], index: 1, kind: input, shape index: {}]   ;;  %s5449_s2 = inlined_call_operand.vmem [shape: f32[1,128], index: 2, kind: input, shape index: {}]   ;;  %s5450_s3 = inlined_call_operand.vmem [shape: bf16[2,288,128], index: 3, kind: output, shape index: {}]  }
   0x1   :  { %s4698_s14 = smov 0  }
   0x2 LB: > { %s25_s15 = sadd.s32 1, %s4668_s13  ;;  %p3456_p0 = scmp.ge.s32.totalorder %s4672_s14, 1  ;;  %s4672_s14 = sphi %s4698_s14, %s13_s14   ;;  %s4668_s13 = sphi %s4696_s13, %s5452_s13   ;;  %s4664_s12 = sphi %s4694_s12, %s5451_s12  }
   0x3   : > { %p27_p1 = scmp.ge.s32.totalorder %s25_s15, 2  ;;  %p168_p2 = scmp.lt.s32.totalorder %s4672_s14, 3 }
   0x5   : > { %s5454_s15 = smov (%p27_p1, %s25_s15), 0  ;;  %p169_p3 = pnand %p3456_p0, %p168_p2 }
   0x6   : > { %vm389_vm0 = vcmask (!%p169_p3), 1041408   ;;  %v4715_v0 = vld [vmem:[%s5448_s1 + $0x8] sm:$0x3] (!%p169_p3)  ;;  %v3459_v1 = vld [vmem:[%s5448_s1 + $0x2] sm:$0x3] (!%p169_p3)  ;;  %p202_p4 = scmp.lt.s32.totalorder (!%p169_p3), %s4664_s12, 1 }
   0x7   : > { %172 = sbr.rel (%p169_p3) target bundleno = 567 (0x237), region = 32  ;;  %4618 = vmatprep.subr.msk.bf16.mxu0 (!%p169_p3), %vm389_vm0, %v4715_v0  ;;  %4614 = vmatprep.subr.msk.bf16.mxu1 (!%p169_p3), %vm389_vm0, %v3459_v1  ;;  %v4725_v2 = vsel (!%p169_p3), %vm389_vm0, %v4715_v0, 0  ;;  %v391_v3 = vsel (!%p169_p3), %vm389_vm0, %v3459_v1, 0  ;;  %v3553_v4 = vld [vmem:[%s5448_s1 + $0xa] sm:$0x3] (!%p169_p3)  ;;  %vm334_vm1 = vcmask (!%p169_p3), 31744  }
   0x8   : > { %4135 = vmatpush3.bf16.msra.mxu0 (!%p169_p3), %v4725_v2  ;;  %3983 = vmatpush3.bf16.msra.mxu1 (!%p169_p3), %v391_v3  ;;  %v277_v5 = vld [vmem:[%s5448_s1] sm:$0x3] (!%p169_p3)  ;;  %v1893_v20 = vsel (!%p169_p3), %vm389_vm0, %v3553_v4, 0  ;;  %v4765_v26 = vld [vmem:[%s5448_s1 + $0xc] sm:$0x3] (!%p169_p3) }
   0x9   : > { %4620 = vmatprep.subr.msk.bf16.mxu0 (!%p169_p3), %vm389_vm0, %v3553_v4  ;;  %4615 = vmatprep.subr.msk.bf16.mxu1 (!%p169_p3), %vm389_vm0, %v277_v5  ;;  %v625_v18 = vsel (!%p169_p3), %vm389_vm0, %v277_v5, 0  ;;  %v4770_v27 = vld [vmem:[%s5448_s1 + $0x4] sm:$0x3] (!%p169_p3) }
   0xe   : > { %s5456_s12 = smov (!%p202_p4, %s4664_s12), 1 }
   0xf   : > { %s4624_s24 = smul.u32 328, %s5456_s12 }
  0x10   : > { %s4625_s17 = smul.u32 144, %s5456_s12 }
  0x11   : > { %s4743_s27 = scalar_lea.vmem %s5447_s0, %s4624_s24 }
  0x12   : > { %v278_v6 = vld [vmem:[%s4743_s27 + $0x1] sm:$0xff]  ;;  %v279_v7 = vld [vmem:[%s4743_s27 + $0x9] sm:$0xff]  ;;  %v1456_v8 = vld [vmem:[%s4743_s27 + $0x13] sm:$0xff]  ;;  %s5378_s20 = scalar_lea.vmem %s5450_s3, %s4625_s17 }
  0x13   : > { %v314_v9 = vpack.c.bf16 %v279_v7, %v278_v6  ;;  %v1457_v10 = vld [vmem:[%s4743_s27 + $0x1b] sm:$0xff]  ;;  %v280_v11 = vld [vmem:[%s4743_s27 + $0x11] sm:$0xff]  ;;  %v1458_v15 = vld [vmem:[%s4743_s27 + $0x23] sm:$0xff] }
  0x14   : > { %v281_v12 = vld [vmem:[%s4743_s27 + $0x19] sm:$0xff]  ;;  %v1492_v13 = vpack.c.bf16 %v1457_v10, %v1456_v8  ;;  %v1459_v16 = vld [vmem:[%s4743_s27 + $0x2b] sm:$0xff]  ;;  %v282_v17 = vld [vmem:[%s4743_s27 + $0x21] sm:$0xff] }
  0x15   : > { %v315_v14 = vpack.c.bf16 %v281_v12, %v280_v11  ;;  %3984 = vmatprep.mubr.msk.bf16.mxu1 %vm334_vm1, %v314_v9  ;;  %v1493_v19 = vpack.c.bf16 %v1459_v16, %v1458_v15  ;;  %v283_v21 = vld [vmem:[%s4743_s27 + $0x29] sm:$0xff]  ;;  %v1460_v22 = vld [vmem:[%s4743_s27 + $0x33] sm:$0xff]  ;;  %v1461_v23 = vld [vmem:[%s4743_s27 + $0x3b] sm:$0xff] }
  0x16   : > { %4136 = vmatprep.mubr.msk.bf16.mxu0 %vm334_vm1, %v1492_v13  ;;  %v316_v24 = vpack.c.bf16 %v283_v21, %v282_v17  ;;  %v1494_v25 = vpack.c.bf16 %v1461_v23, %v1460_v22  ;;  %v284_v28 = vld [vmem:[%s4743_s27 + $0x31] sm:$0xff]  ;;  %v285_v29 = vld [vmem:[%s4743_s27 + $0x39] sm:$0xff]  ;;  %v1462_v30 = vld [vmem:[%s4743_s27 + $0x43] sm:$0xff] }
  0x17   : > { %3985 = vmatmul.mubr.msk.bf16.vlgmr.msra.gmra.mrb[0].mxu1 %vm334_vm1, %v315_v14  ;;  %4137 = vmatmul.mubr.msk.bf16.vlgmr.msra.gmra.mrb[0].mxu0 %vm334_vm1, %v1493_v19  ;;  %v1463_v31 = vld [vmem:[%s4743_s27 + $0x4b] sm:$0xff]  ;;  %v286_v32 = vld [vmem:[%s4743_s27 + $0x41] sm:$0xff]  ;;  %v1464_v34 = vld [vmem:[%s4743_s27 + $0x53] sm:$0xff]  ;;  %v317_v36 = vpack.c.bf16 %v285_v29, %v284_v28  ;;  %v2219_v28 = vsel %vm389_vm0, %v4765_v26, 0 }
  0x18   : > { %4021 = vmatpush3.bf16.msra.mxu1 %v625_v18  ;;  %4173 = vmatpush3.bf16.msra.mxu0 %v1893_v20  ;;  %v287_v33 = vld [vmem:[%s4743_s27 + $0x49] sm:$0xff]  ;;  %v1465_v35 = vld [vmem:[%s4743_s27 + $0x5b] sm:$0xff]  ;;  %v1495_v37 = vpack.c.bf16 %v1463_v31, %v1462_v30  ;;  %v288_v40 = vld [vmem:[%s4743_s27 + $0x51] sm:$0xff] }
  0x19   : > { %3988 = vmatprep.mubr.msk.bf16.mxu1 %vm334_vm1, %v316_v24  ;;  %4140 = vmatprep.mubr.msk.bf16.mxu0 %vm334_vm1, %v1494_v25  ;;  %v318_v38 = vpack.c.bf16 %v287_v33, %v286_v32  ;;  %v1496_v39 = vpack.c.bf16 %v1465_v35, %v1464_v34  ;;  %v289_v41 = vld [vmem:[%s4743_s27 + $0x59] sm:$0xff]  ;;  %v1466_v42 = vld [vmem:[%s4743_s27 + $0x63] sm:$0xff]  ;;  %v1467_v43 = vld [vmem:[%s4743_s27 + $0x6b] sm:$0xff] }
  0x1a   : > { %4621 = vmatprep.subr.msk.bf16.mxu0 %vm389_vm0, %v4765_v26  ;;  %4616 = vmatprep.subr.msk.bf16.mxu1 %vm389_vm0, %v4770_v27  ;;  %v290_v44 = vld [vmem:[%s4743_s27 + $0x61] sm:$0xff]  ;;  %v291_v45 = vld [vmem:[%s4743_s27 + $0x69] sm:$0xff]  ;;  %v1468_v46 = vld [vmem:[%s4743_s27 + $0x73] sm:$0xff]  ;;  %v319_v48 = vpack.c.bf16 %v289_v41, %v288_v40  ;;  %v1497_v49 = vpack.c.bf16 %v1467_v43, %v1466_v42 }
  0x1b   : > { %v1469_v47 = vld [vmem:[%s4743_s27 + $0x7b] sm:$0xff]  ;;  %v320_v50 = vpack.c.bf16 %v291_v45, %v290_v44  ;;  %v292_v52 = vld [vmem:[%s4743_s27 + $0x71] sm:$0xff]  ;;  %v1470_v54 = vld [vmem:[%s4743_s27 + $0x83] sm:$0xff] }
  0x1c   : > { %v1498_v51 = vpack.c.bf16 %v1469_v47, %v1468_v46  ;;  %v293_v53 = vld [vmem:[%s4743_s27 + $0x79] sm:$0xff]  ;;  %v1471_v55 = vld [vmem:[%s4743_s27 + $0x8b] sm:$0xff]  ;;  %v294_v56 = vld [vmem:[%s4743_s27 + $0x81] sm:$0xff] }
  0x1d   : > { %v295_v57 = vld [vmem:[%s4743_s27 + $0x89] sm:$0xff]  ;;  %v1472_v58 = vld [vmem:[%s4743_s27 + $0x93] sm:$0xff]  ;;  %v1473_v59 = vld [vmem:[%s4743_s27 + $0x9b] sm:$0xff]  ;;  %v321_v60 = vpack.c.bf16 %v293_v53, %v292_v52  ;;  %v1499_v61 = vpack.c.bf16 %v1471_v55, %v1470_v54 }
  0x1e   : > { %v322_v62 = vpack.c.bf16 %v295_v57, %v294_v56  ;;  %v1500_v63 = vpack.c.bf16 %v1473_v59, %v1472_v58  ;;  %v296_v1 = vld [vmem:[%s4743_s27 + $0x91] sm:$0xff]  ;;  %v297_v3 = vld [vmem:[%s4743_s27 + $0x99] sm:$0xff]  ;;  %v1474_v4 = vld [vmem:[%s4743_s27 + $0xa3] sm:$0xff] }
  0x1f   : > { %3989 = vmatmul.mubr.msk.bf16.gmra.mrb[4].mxu1 %vm334_vm1, %v317_v36  ;;  %4141 = vmatmul.mubr.msk.bf16.gmra.mrb[4].mxu0 %vm334_vm1, %v1495_v37  ;;  %v1475_v5 = vld [vmem:[%s4743_s27 + $0xab] sm:$0xff]  ;;  %v298_v6 = vld [vmem:[%s4743_s27 + $0xa1] sm:$0xff]  ;;  %v1782_v8 = vld [vmem:[%s4743_s27 + $0x14] sm:$0xff]  ;;  %v323_v10 = vpack.c.bf16 %v297_v3, %v296_v1 }
  0x20   : > { %3992 = vmatprep.mubr.msk.bf16.mxu1 %vm334_vm1, %v318_v38  ;;  %4144 = vmatprep.mubr.msk.bf16.mxu0 %vm334_vm1, %v1496_v39  ;;  %v299_v7 = vld [vmem:[%s4743_s27 + $0xa9] sm:$0xff]  ;;  %v1783_v9 = vld [vmem:[%s4743_s27 + $0x1c] sm:$0xff]  ;;  %v1501_v11 = vpack.c.bf16 %v1475_v5, %v1474_v4  ;;  %v300_v14 = vld [vmem:[%s4743_s27 + $0xb1] sm:$0xff] }
  0x21   : > { %v324_v12 = vpack.c.bf16 %v299_v7, %v298_v6  ;;  %v1818_v13 = vpack.c.bf16 %v1783_v9, %v1782_v8  ;;  %v301_v15 = vld [vmem:[%s4743_s27 + $0xb9] sm:$0xff]  ;;  %v1784_v16 = vld [vmem:[%s4743_s27 + $0x24] sm:$0xff]  ;;  %v1785_v17 = vld [vmem:[%s4743_s27 + $0x2c] sm:$0xff] }
  0x22   : > { %v302_v18 = vld [vmem:[%s4743_s27 + $0xc1] sm:$0xff]  ;;  %v303_v19 = vld [vmem:[%s4743_s27 + $0xc9] sm:$0xff]  ;;  %v1786_v20 = vld [vmem:[%s4743_s27 + $0x34] sm:$0xff]  ;;  %v325_v22 = vpack.c.bf16 %v301_v15, %v300_v14  ;;  %v4835_v23 = vpack.c.bf16 %v1785_v17, %v1784_v16  ;;  %v915_v15 = vsel %vm389_vm0, %v4770_v27, 0 }
  0x23   : > { %v1787_v21 = vld [vmem:[%s4743_s27 + $0x3c] sm:$0xff]  ;;  %v326_v24 = vpack.c.bf16 %v303_v19, %v302_v18  ;;  %v4845_v29 = vld [vmem:[%s5448_s1 + $0xe] sm:$0x3]  ;;  %v304_v30 = vld [vmem:[%s4743_s27 + $0xd1] sm:$0xff] }
  0x24   : > { %v4837_v25 = vpack.c.bf16 %v1787_v21, %v1786_v20  ;;  %v305_v31 = vld [vmem:[%s4743_s27 + $0xd9] sm:$0xff]  ;;  %v1788_v32 = vld [vmem:[%s4743_s27 + $0x44] sm:$0xff]  ;;  %v1789_v26 = vld [vmem:[%s4743_s27 + $0x4c] sm:$0xff] }
  0x25   : > { %v306_v33 = vld [vmem:[%s4743_s27 + $0xe1] sm:$0xff]  ;;  %v307_v34 = vld [vmem:[%s4743_s27 + $0xe9] sm:$0xff]  ;;  %v1790_v35 = vld [vmem:[%s4743_s27 + $0x54] sm:$0xff]  ;;  %v327_v37 = vpack.c.bf16 %v305_v31, %v304_v30  ;;  %v4862_v38 = vpack.c.bf16 %v1789_v26, %v1788_v32 }
  0x26   : > { %v1791_v36 = vld [vmem:[%s4743_s27 + $0x5c] sm:$0xff]  ;;  %v328_v39 = vpack.c.bf16 %v307_v34, %v306_v33  ;;  %v308_v41 = vld [vmem:[%s4743_s27 + $0xf1] sm:$0xff]  ;;  %v1792_v43 = vld [vmem:[%s4743_s27 + $0x64] sm:$0xff] }
  0x27   : > { %3993 = vmatmul.mubr.msk.bf16.gmra.mrb[8].mxu1 %vm334_vm1, %v319_v48  ;;  %4145 = vmatmul.mubr.msk.bf16.gmra.mrb[8].mxu0 %vm334_vm1, %v1497_v49  ;;  %v4864_v40 = vpack.c.bf16 %v1791_v36, %v1790_v35  ;;  %v309_v42 = vld [vmem:[%s4743_s27 + $0xf9] sm:$0xff]  ;;  %v1793_v44 = vld [vmem:[%s4743_s27 + $0x6c] sm:$0xff]  ;;  %v310_v45 = vld [vmem:[%s4743_s27 + $0x101] sm:$0xff] }
  0x28   : > { %3996 = vmatprep.mubr.msk.bf16.mxu1 %vm334_vm1, %v320_v50  ;;  %4148 = vmatprep.mubr.msk.bf16.mxu0 %vm334_vm1, %v1498_v51  ;;  %v311_v46 = vld [vmem:[%s4743_s27 + $0x109] sm:$0xff]  ;;  %v1794_v47 = vld [vmem:[%s4743_s27 + $0x74] sm:$0xff]  ;;  %v1795_v48 = vld [vmem:[%s4743_s27 + $0x7c] sm:$0xff]  ;;  %v329_v49 = vpack.c.bf16 %v309_v42, %v308_v41  ;;  %v4880_v50 = vpack.c.bf16 %v1793_v44, %v1792_v43 }
  0x29   : > { %v330_v51 = vpack.c.bf16 %v311_v46, %v310_v45  ;;  %v4882_v52 = vpack.c.bf16 %v1795_v48, %v1794_v47  ;;  %v312_v53 = vld [vmem:[%s4743_s27 + $0x111] sm:$0xff]  ;;  %v313_v54 = vld [vmem:[%s4743_s27 + $0x119] sm:$0xff]  ;;  %v1796_v55 = vld [vmem:[%s4743_s27 + $0x84] sm:$0xff] }
  0x2a   : > { %v1797_v56 = vld [vmem:[%s4743_s27 + $0x8c] sm:$0xff]  ;;  %v223_v57 = vld [vmem:[%s4743_s27] sm:$0xff]  ;;  %v1798_v59 = vld [vmem:[%s4743_s27 + $0x94] sm:$0xff] }
  0x2b   : > { %v224_v58 = vld [vmem:[%s4743_s27 + $0x8] sm:$0xff]  ;;  %v225_v3 = vld [vmem:[%s4743_s27 + $0x10] sm:$0xff]  ;;  %v226_v4 = vld [vmem:[%s4743_s27 + $0x18] sm:$0xff] }
  0x2c   : > { %v1800_v5 = vld [vmem:[%s4743_s27 + $0xa4] sm:$0xff]  ;;  %v1801_v6 = vld [vmem:[%s4743_s27 + $0xac] sm:$0xff]  ;;  %v1802_v9 = vld [vmem:[%s4743_s27 + $0xb4] sm:$0xff] }
  0x2d   : > { %v227_v7 = vld [vmem:[%s4743_s27 + $0x20] sm:$0xff]  ;;  %v228_v8 = vld [vmem:[%s4743_s27 + $0x28] sm:$0xff]  ;;  %v229_v17 = vld [vmem:[%s4743_s27 + $0x30] sm:$0xff] }
  0x2e   : > { %v4926_v16 = vld [vmem:[%s5448_s1 + $0x6] sm:$0x3]  ;;  %v230_v18 = vld [vmem:[%s4743_s27 + $0x38] sm:$0xff]  ;;  %v1805_v27 = vld [vmem:[%s4743_s27 + $0xcc] sm:$0xff] }
  0x2f   : > { %3997 = vmatmul.mubr.msk.bf16.gmra.mrb[12].mxu1 %vm334_vm1, %v321_v60  ;;  %4149 = vmatmul.mubr.msk.bf16.gmra.mrb[12].mxu0 %vm334_vm1, %v1499_v61  ;;  %v1799_v60 = vld [vmem:[%s4743_s27 + $0x9c] sm:$0xff]  ;;  %v331_v61 = vpack.c.bf16 %v313_v54, %v312_v53  ;;  %v1804_v19 = vld [vmem:[%s4743_s27 + $0xc4] sm:$0xff]  ;;  %v233_v26 = vld [vmem:[%s4743_s27 + $0x50] sm:$0xff] }
  0x30   : > { %4000 = vmatprep.mubr.msk.bf16.mxu1 %vm334_vm1, %v322_v62  ;;  %4152 = vmatprep.mubr.msk.bf16.mxu0 %vm334_vm1, %v1500_v63  ;;  %v4898_v62 = vpack.c.bf16 %v1797_v56, %v1796_v55  ;;  %v259_v63 = vpack.c.bf16 %v224_v58, %v223_v57  ;;  %v4900_v1 = vpack.c.bf16 %v1799_v60, %v1798_v59  ;;  %v231_v20 = vld [vmem:[%s4743_s27 + $0x40] sm:$0xff]  ;;  %v232_v21 = vld [vmem:[%s4743_s27 + $0x48] sm:$0xff]  ;;  %v234_v33 = vld [vmem:[%s4743_s27 + $0x58] sm:$0xff] }
  0x31   : > { %v4943_v30 = vpack.c.bf16 %v1805_v27, %v1804_v19  ;;  %v263_v31 = vpack.c.bf16 %v232_v21, %v231_v20  ;;  %v1808_v34 = vld [vmem:[%s4743_s27 + $0xe4] sm:$0xff]  ;;  %v1809_v35 = vld [vmem:[%s4743_s27 + $0xec] sm:$0xff]  ;;  %v1811_v41 = vld [vmem:[%s4743_s27 + $0xfc] sm:$0xff]  ;;  %v264_v42 = vpack.c.bf16 %v234_v33, %v233_v26 }
  0x32   : > { %v235_v36 = vld [vmem:[%s4743_s27 + $0x60] sm:$0xff]  ;;  %v4961_v43 = vpack.c.bf16 %v1809_v35, %v1808_v34  ;;  %v237_v46 = vld [vmem:[%s4743_s27 + $0x70] sm:$0xff]  ;;  %v238_v47 = vld [vmem:[%s4743_s27 + $0x78] sm:$0xff] }
  0x33   : > { %v1812_v48 = vld [vmem:[%s4743_s27 + $0x104] sm:$0xff]  ;;  %v1814_v54 = vld [vmem:[%s4743_s27 + $0x114] sm:$0xff]  ;;  %v1815_v55 = vld [vmem:[%s4743_s27 + $0x11c] sm:$0xff]  ;;  %v266_v56 = vpack.c.bf16 %v238_v47, %v237_v46 }
  0x34   : > { %v240_v53 = vld [vmem:[%s4743_s27 + $0x88] sm:$0xff]  ;;  %v4981_v59 = vpack.c.bf16 %v1815_v55, %v1814_v54  ;;  %v241_v60 = vld [vmem:[%s4743_s27 + $0x90] sm:$0xff]  ;;  %v250_v27 = vld [vmem:[%s4743_s27 + $0xd8] sm:$0xff] }
  0x35   : > { %v5013_v19 = vld [vmem:[%s5448_s1 + $0x10] sm:$0x3]  ;;  %v252_v20 = vld [vmem:[%s4743_s27 + $0xe8] sm:$0xff]  ;;  %v258_v33 = vld [vmem:[%s4743_s27 + $0x118] sm:$0xff] }
  0x36   : > { %v805_v34 = vld [vmem:[%s4743_s27 + $0xa] sm:$0xff]  ;;  %v820_v54 = vld [vmem:[%s4743_s27 + $0x82] sm:$0xff] }
  0x37   : > { %4001 = vmatmul.mubr.msk.bf16.gmra.mrb[16].mxu1 %vm334_vm1, %v323_v10  ;;  %4153 = vmatmul.mubr.msk.bf16.gmra.mrb[16].mxu0 %vm334_vm1, %v1501_v11  ;;  %v1803_v10 = vld [vmem:[%s4743_s27 + $0xbc] sm:$0xff]  ;;  %v260_v11 = vpack.c.bf16 %v226_v4, %v225_v3  ;;  %v1817_v3 = vld [vmem:[%s4743_s27 + $0x12c] sm:$0xff] }
  0x38   : > { %4004 = vmatprep.mubr.msk.bf16.mxu1 %vm334_vm1, %v324_v12  ;;  %4174 = vmatprep.mubr.msk.bf16.mxu0 %vm334_vm1, %v1818_v13  ;;  %v4916_v12 = vpack.c.bf16 %v1801_v6, %v1800_v5  ;;  %v261_v13 = vpack.c.bf16 %v228_v8, %v227_v7  ;;  %v4918_v14 = vpack.c.bf16 %v1803_v10, %v1802_v9  ;;  %v243_v4 = vld [vmem:[%s4743_s27 + $0xa0] sm:$0xff]  ;;  %v244_v5 = vld [vmem:[%s4743_s27 + $0xa8] sm:$0xff]  ;;  %v245_v9 = vld [vmem:[%s4743_s27 + $0xb0] sm:$0xff] }
  0x39   : > { %v269_v8 = vpack.c.bf16 %v244_v5, %v243_v4  ;;  %v246_v10 = vld [vmem:[%s4743_s27 + $0xb8] sm:$0xff]  ;;  %v813_v46 = vld [vmem:[%s4743_s27 + $0x4a] sm:$0xff] }
  0x3a   : > { %v821_v55 = vld [vmem:[%s4743_s27 + $0x8a] sm:$0xff] }
  0x3b   : > { %v2434_v4 = vld [vmem:[%s4743_s27 + $0x25] sm:$0xff] }
  0x3f   : > { %4005 = vmatmul.mubr.msk.bf16.gmra.mrb[20].mxu1 %vm334_vm1, %v325_v22  ;;  %4175 = vmatmul.mubr.msk.bf16.vlgmr.msra.gmra.mrb[0].mxu0 %vm334_vm1, %v4835_v23  ;;  %v1806_v22 = vld [vmem:[%s4743_s27 + $0xd4] sm:$0xff] }
  0x40   : > { %4008 = vmatprep.mubr.msk.bf16.mxu1 %vm334_vm1, %v326_v24  ;;  %4211 = vmatpush3.bf16.msra.mxu0 %v2219_v28  ;;  %v1807_v24 = vld [vmem:[%s4743_s27 + $0xdc] sm:$0xff]  ;;  %v262_v28 = vpack.c.bf16 %v230_v18, %v229_v17  ;;  %v2545_v18 = vsel %vm389_vm0, %v4845_v29, 0 }
  0x41   : > { %4178 = vmatprep.mubr.msk.bf16.mxu0 %vm334_vm1, %v4837_v25  ;;  %4622 = vmatprep.subr.msk.bf16.mxu0 %vm389_vm0, %v4845_v29  ;;  %v4945_v32 = vpack.c.bf16 %v1807_v24, %v1806_v22  ;;  %v251_v29 = vld [vmem:[%s4743_s27 + $0xe0] sm:$0xff] }
  0x42   : > { %v273_v22 = vpack.c.bf16 %v252_v20, %v251_v29  ;;  %v255_v24 = vld [vmem:[%s4743_s27 + $0x100] sm:$0xff] }
  0x47   : > { %4009 = vmatmul.mubr.msk.bf16.gmra.mrb[24].mxu1 %vm334_vm1, %v327_v37  ;;  %4179 = vmatmul.mubr.msk.bf16.gmra.mrb[4].mxu0 %vm334_vm1, %v4862_v38  ;;  %v236_v37 = vld [vmem:[%s4743_s27 + $0x68] sm:$0xff] }
  0x48   : > { %4012 = vmatprep.mubr.msk.bf16.mxu1 %vm334_vm1, %v328_v39  ;;  %4182 = vmatprep.mubr.msk.bf16.mxu0 %vm334_vm1, %v4864_v40  ;;  %v1810_v39 = vld [vmem:[%s4743_s27 + $0xf4] sm:$0xff]  ;;  %v265_v44 = vpack.c.bf16 %v236_v37, %v235_v36 }
  0x49   : > { %v4963_v45 = vpack.c.bf16 %v1811_v41, %v1810_v39  ;;  %v807_v37 = vld [vmem:[%s4743_s27 + $0x1a] sm:$0xff]  ;;  %v809_v39 = vld [vmem:[%s4743_s27 + $0x2a] sm:$0xff] }
  0x4f   : > { %4013 = vmatmul.mubr.msk.bf16.gmra.mrb[28].mxu1 %vm334_vm1, %v329_v49  ;;  %4183 = vmatmul.mubr.msk.bf16.gmra.mrb[8].mxu0 %vm334_vm1, %v4880_v50  ;;  %v1813_v49 = vld [vmem:[%s4743_s27 + $0x10c] sm:$0xff] }
  0x50   : > { %4016 = vmatprep.mubr.msk.bf16.mxu1 %vm334_vm1, %v330_v51  ;;  %4186 = vmatprep.mubr.msk.bf16.mxu0 %vm334_vm1, %v4882_v52  ;;  %v239_v51 = vld [vmem:[%s4743_s27 + $0x80] sm:$0xff]  ;;  %v4979_v57 = vpack.c.bf16 %v1813_v49, %v1812_v48  ;;  %v817_v49 = vld [vmem:[%s4743_s27 + $0x6a] sm:$0xff] }
  0x51   : > { %v267_v58 = vpack.c.bf16 %v240_v53, %v239_v51  ;;  %v815_v48 = vld [vmem:[%s4743_s27 + $0x5a] sm:$0xff] }
  0x57   : > { %4017 = vmatmul.mubr.msk.bf16.gmra.mrb[32].mxu1 %vm334_vm1, %v331_v61  ;;  %4187 = vmatmul.mubr.msk.bf16.gmra.mrb[12].mxu0 %vm334_vm1, %v4898_v62  ;;  %v242_v61 = vld [vmem:[%s4743_s27 + $0x98] sm:$0xff] }
  0x58   : > { %4022 = vmatprep.mubr.msk.bf16.mxu1 %vm334_vm1, %v259_v63  ;;  %4190 = vmatprep.mubr.msk.bf16.mxu0 %vm334_vm1, %v4900_v1  ;;  %v1816_v63 = vld [vmem:[%s4743_s27 + $0x124] sm:$0xff]  ;;  %v268_v6 = vpack.c.bf16 %v242_v61, %v241_v60  ;;  %v823_v60 = vld [vmem:[%s4743_s27 + $0x9a] sm:$0xff] }
  0x59   : > { %v4995_v7 = vpack.c.bf16 %v1817_v3, %v1816_v63  ;;  %v2143_v61 = vld [vmem:[%s4743_s27 + $0x13c] sm:$0xff]  ;;  %v825_v3 = vld [vmem:[%s4743_s27 + $0xaa] sm:$0xff] }
  0x5a   : > { %v824_v63 = vld [vmem:[%s4743_s27 + $0xa2] sm:$0xff] }
  0x5f   : > { %4023 = vmatmul.mubr.msk.bf16.vlgmr.msra.gmra.mrb[0].mxu1 %vm334_vm1, %v260_v11  ;;  %4191 = vmatmul.mubr.msk.bf16.gmra.mrb[16].mxu0 %vm334_vm1, %v4916_v12  ;;  %v247_v11 = vld [vmem:[%s4743_s27 + $0xc0] sm:$0xff] }
  0x60   : > { %4026 = vmatprep.mubr.msk.bf16.mxu1 %vm334_vm1, %v261_v13  ;;  %4194 = vmatprep.mubr.msk.bf16.mxu0 %vm334_vm1, %v4918_v14  ;;  %v248_v13 = vld [vmem:[%s4743_s27 + $0xc8] sm:$0xff] }
  0x61   : > { %4059 = vmatpush3.bf16.msra.mxu1 %v915_v15  ;;  %v270_v15 = vpack.c.bf16 %v246_v10, %v245_v9  ;;  %v271_v17 = vpack.c.bf16 %v248_v13, %v247_v11  ;;  %v827_v10 = vld [vmem:[%s4743_s27 + $0xba] sm:$0xff] }
  0x62   : > { %4617 = vmatprep.subr.msk.bf16.mxu1 %vm389_vm0, %v4926_v16  ;;  %v2436_v11 = vld [vmem:[%s4743_s27 + $0x35] sm:$0xff]  ;;  %v2437_v13 = vld [vmem:[%s4743_s27 + $0x3d] sm:$0xff] }
  0x63   : > { %v2471_v29 = vpack.c.bf16 %v2437_v13, %v2436_v11 }
  0x67   : > { %4027 = vmatmul.mubr.msk.bf16.gmra.mrb[4].mxu1 %vm334_vm1, %v262_v28  ;;  %4195 = vmatmul.mubr.msk.bf16.gmra.mrb[20].mxu0 %vm334_vm1, %v4943_v30  ;;  %v256_v28 = vld [vmem:[%s4743_s27 + $0x108] sm:$0xff] }
  0x68   : > { %4030 = vmatprep.mubr.msk.bf16.mxu1 %vm334_vm1, %v263_v31  ;;  %4198 = vmatprep.mubr.msk.bf16.mxu0 %vm334_vm1, %v4945_v32  ;;  %v275_v26 = vpack.c.bf16 %v256_v28, %v255_v24  ;;  %v2440_v24 = vld [vmem:[%s4743_s27 + $0x55] sm:$0xff]  ;;  %v2441_v28 = vld [vmem:[%s4743_s27 + $0x5d] sm:$0xff] }
  0x6f   : > { %4031 = vmatmul.mubr.msk.bf16.gmra.mrb[8].mxu1 %vm334_vm1, %v264_v42  ;;  %4199 = vmatmul.mubr.msk.bf16.gmra.mrb[24].mxu0 %vm334_vm1, %v4961_v43 }
  0x70   : > { %4034 = vmatprep.mubr.msk.bf16.mxu1 %vm334_vm1, %v265_v44  ;;  %4202 = vmatprep.mubr.msk.bf16.mxu0 %vm334_vm1, %v4963_v45  ;;  %v1241_v44 = vsel %vm389_vm0, %v4926_v16, 0  ;;  %v812_v16 = vld [vmem:[%s4743_s27 + $0x42] sm:$0xff] }
  0x77   : > { %4035 = vmatmul.mubr.msk.bf16.gmra.mrb[12].mxu1 %vm334_vm1, %v266_v56  ;;  %4203 = vmatmul.mubr.msk.bf16.gmra.mrb[28].mxu0 %vm334_vm1, %v4979_v57 }
  0x78   : > { %4038 = vmatprep.mubr.msk.bf16.mxu1 %vm334_vm1, %v267_v58  ;;  %4206 = vmatprep.mubr.msk.bf16.mxu0 %vm334_vm1, %v4981_v59  ;;  %v5110_v58 = vpack.c.bf16 %v821_v55, %v820_v54  ;;  %v2450_v54 = vld [vmem:[%s4743_s27 + $0xa5] sm:$0xff]  ;;  %v2451_v55 = vld [vmem:[%s4743_s27 + $0xad] sm:$0xff] }
  0x7f   : > { %4039 = vmatmul.mubr.msk.bf16.gmra.mrb[16].mxu1 %vm334_vm1, %v268_v6  ;;  %4207 = vmatmul.mubr.msk.bf16.gmra.mrb[32].mxu0 %vm334_vm1, %v4995_v7 }
  0x80   : > { %4042 = vmatprep.mubr.msk.bf16.mxu1 %vm334_vm1, %v269_v8  ;;  %4212 = vmatprep.mubr.msk.bf16.mxu0 %vm334_vm1, %v4835_v23  ;;  %v249_v23 = vld [vmem:[%s4743_s27 + $0xd0] sm:$0xff]  ;;  %v5130_v8 = vpack.c.bf16 %v825_v3, %v824_v63  ;;  %v2453_v63 = vld [vmem:[%s4743_s27 + $0xbd] sm:$0xff]  ;;  %v2454_v3 = vld [vmem:[%s4743_s27 + $0xc5] sm:$0xff] }
  0x81   : > { %v272_v21 = vpack.c.bf16 %v250_v27, %v249_v23  ;;  %v2439_v23 = vld [vmem:[%s4743_s27 + $0x4d] sm:$0xff] }
  0x87   : > { %4043 = vmatmul.mubr.msk.bf16.gmra.mrb[20].mxu1 %vm334_vm1, %v270_v15  ;;  %4213 = vmatmul.mubr.msk.bf16.vlgmr.msra.gmra.mrb[0].mxu0 %vm334_vm1, %v4837_v25  ;;  %v253_v25 = vld [vmem:[%s4743_s27 + $0xf0] sm:$0xff]  ;;  %v828_v15 = vld [vmem:[%s4743_s27 + $0xc2] sm:$0xff] }
  0x88   : > { %4046 = vmatprep.mubr.msk.bf16.mxu1 %vm334_vm1, %v271_v17  ;;  %4249 = vmatpush3.bf16.msra.mxu0 %v2545_v18  ;;  %v829_v17 = vld [vmem:[%s4743_s27 + $0xca] sm:$0xff] }
  0x89   : > { %4216 = vmatprep.mubr.msk.bf16.mxu0 %vm334_vm1, %v4862_v38  ;;  %4623 = vmatprep.subr.msk.bf16.mxu0 %vm389_vm0, %v5013_v19  ;;  %v254_v38 = vld [vmem:[%s4743_s27 + $0xf8] sm:$0xff]  ;;  %v2438_v18 = vld [vmem:[%s4743_s27 + $0x45] sm:$0xff]  ;;  %v5148_v20 = vpack.c.bf16 %v829_v17, %v828_v15  ;;  %v2463_v15 = vld [vmem:[%s4743_s27 + $0x10d] sm:$0xff] }
  0x8a   : > { %v274_v31 = vpack.c.bf16 %v254_v38, %v253_v25  ;;  %v830_v25 = vld [vmem:[%s4743_s27 + $0xd2] sm:$0xff]  ;;  %v831_v38 = vld [vmem:[%s4743_s27 + $0xda] sm:$0xff] }
  0x8f   : > { %4047 = vmatmul.mubr.msk.bf16.gmra.mrb[24].mxu1 %vm334_vm1, %v272_v21  ;;  %4217 = vmatmul.mubr.msk.bf16.gmra.mrb[4].mxu0 %vm334_vm1, %v4864_v40  ;;  %v257_v40 = vld [vmem:[%s4743_s27 + $0x110] sm:$0xff]  ;;  %v2472_v21 = vpack.c.bf16 %v2439_v23, %v2438_v18  ;;  %v2466_v23 = vld [vmem:[%s4743_s27 + $0x125] sm:$0xff] }
  0x90   : > { %4050 = vmatprep.mubr.msk.bf16.mxu1 %vm334_vm1, %v273_v22  ;;  %4220 = vmatprep.mubr.msk.bf16.mxu0 %vm334_vm1, %v4880_v50  ;;  %v804_v50 = vld [vmem:[%s4743_s27 + $0x2] sm:$0xff]  ;;  %v276_v35 = vpack.c.bf16 %v258_v33, %v257_v40  ;;  %v2871_v22 = vsel %vm389_vm0, %v5013_v19, 0  ;;  %v2443_v40 = vld [vmem:[%s4743_s27 + $0x6d] sm:$0xff]  ;;  %v5166_v33 = vpack.c.bf16 %v831_v38, %v830_v25 }
  0x91   : > { %v840_v36 = vpack.c.bf16 %v805_v34, %v804_v50  ;;  %v832_v19 = vld [vmem:[%s4743_s27 + $0xe2] sm:$0xff]  ;;  %v2473_v50 = vpack.c.bf16 %v2441_v28, %v2440_v24  ;;  %v2761_v38 = vld [vmem:[%s4743_s27 + $0x2e] sm:$0xff] }
  0x92   : > { %v2760_v25 = vld [vmem:[%s4743_s27 + $0x26] sm:$0xff] }
  0x93   : > { %v2796_v28 = vpack.c.bf16 %v2761_v38, %v2760_v25  ;;  %v2788_v25 = vld [vmem:[%s4743_s27 + $0x106] sm:$0xff]  ;;  %v2789_v38 = vld [vmem:[%s4743_s27 + $0x10e] sm:$0xff] }
  0x97   : > { %4051 = vmatmul.mubr.msk.bf16.gmra.mrb[28].mxu1 %vm334_vm1, %v274_v31  ;;  %4221 = vmatmul.mubr.msk.bf16.gmra.mrb[8].mxu0 %vm334_vm1, %v4882_v52  ;;  %v806_v52 = vld [vmem:[%s4743_s27 + $0x12] sm:$0xff]  ;;  %v833_v31 = vld [vmem:[%s4743_s27 + $0xea] sm:$0xff] }
  0x98   : > { %4054 = vmatprep.mubr.msk.bf16.mxu1 %vm334_vm1, %v275_v26  ;;  %4224 = vmatprep.mubr.msk.bf16.mxu0 %vm334_vm1, %v4898_v62  ;;  %v808_v62 = vld [vmem:[%s4743_s27 + $0x22] sm:$0xff]  ;;  %v5056_v41 = vpack.c.bf16 %v807_v37, %v806_v52  ;;  %v5168_v34 = vpack.c.bf16 %v833_v31, %v832_v19  ;;  %v835_v52 = vld [vmem:[%s4743_s27 + $0xfa] sm:$0xff]  ;;  %v2765_v31 = vld [vmem:[%s4743_s27 + $0x4e] sm:$0xff] }
  0x99   : > { %v5058_v42 = vpack.c.bf16 %v809_v39, %v808_v62  ;;  %v2442_v26 = vld [vmem:[%s4743_s27 + $0x65] sm:$0xff]  ;;  %v2444_v37 = vld [vmem:[%s4743_s27 + $0x75] sm:$0xff]  ;;  %v2445_v62 = vld [vmem:[%s4743_s27 + $0x7d] sm:$0xff] }
  0x9a   : > { %v836_v39 = vld [vmem:[%s4743_s27 + $0x102] sm:$0xff] }
  0x9b   : > { %v2764_v19 = vld [vmem:[%s4743_s27 + $0x46] sm:$0xff] }
  0x9f   : > { %4055 = vmatmul.mubr.msk.bf16.gmra.mrb[32].mxu1 %vm334_vm1, %v276_v35  ;;  %4225 = vmatmul.mubr.msk.bf16.gmra.mrb[12].mxu0 %vm334_vm1, %v4900_v1  ;;  %v810_v1 = vld [vmem:[%s4743_s27 + $0x32] sm:$0xff]  ;;  %v2474_v35 = vpack.c.bf16 %v2443_v40, %v2442_v26  ;;  %v2798_v40 = vpack.c.bf16 %v2765_v31, %v2764_v19  ;;  %v1490_v19 = vld [vmem:[%s4743_s27 + $0x123] sm:$0xff] }
  0xa0   : > { %4060 = vmatprep.mubr.msk.bf16.mxu1 %vm334_vm1, %v840_v36  ;;  %4228 = vmatprep.mubr.msk.bf16.mxu0 %vm334_vm1, %v4916_v12  ;;  %v811_v12 = vld [vmem:[%s4743_s27 + $0x3a] sm:$0xff]  ;;  %v834_v36 = vld [vmem:[%s4743_s27 + $0xf2] sm:$0xff] }
  0xa1   : > { %v5076_v47 = vpack.c.bf16 %v811_v12, %v810_v1  ;;  %v2446_v1 = vld [vmem:[%s4743_s27 + $0x85] sm:$0xff]  ;;  %v2447_v12 = vld [vmem:[%s4743_s27 + $0x8d] sm:$0xff] }
  0xa2   : > { %v1491_v31 = vld [vmem:[%s4743_s27 + $0x12b] sm:$0xff] }
  0xa7   : > { %4061 = vmatmul.mubr.msk.bf16.vlgmr.msra.gmra.mrb[0].mxu1 %vm334_vm1, %v5056_v41  ;;  %4229 = vmatmul.mubr.msk.bf16.gmra.mrb[16].mxu0 %vm334_vm1, %v4918_v14  ;;  %v5078_v14 = vpack.c.bf16 %v813_v46, %v812_v16  ;;  %v5184_v16 = vpack.c.bf16 %v835_v52, %v834_v36  ;;  %v2475_v46 = vpack.c.bf16 %v2445_v62, %v2444_v37  ;;  %v2772_v37 = vld [vmem:[%s4743_s27 + $0x86] sm:$0xff]  ;;  %v2773_v62 = vld [vmem:[%s4743_s27 + $0x8e] sm:$0xff] }
  0xa8   : > { %4064 = vmatprep.mubr.msk.bf16.mxu1 %vm334_vm1, %v5058_v42  ;;  %4232 = vmatprep.mubr.msk.bf16.mxu0 %vm334_vm1, %v4943_v30  ;;  %v814_v30 = vld [vmem:[%s4743_s27 + $0x52] sm:$0xff] }
  0xa9   : > { %4097 = vmatpush3.bf16.msra.mxu1 %v1241_v44  ;;  %v5092_v51 = vpack.c.bf16 %v815_v48, %v814_v30  ;;  %v837_v44 = vld [vmem:[%s4743_s27 + $0x10a] sm:$0xff]  ;;  %v2476_v48 = vpack.c.bf16 %v2447_v12, %v2446_v1  ;;  %v2774_v12 = vld [vmem:[%s4743_s27 + $0x96] sm:$0xff] }
  0xaa   : > { %4619 = vmatprep.subr.msk.bf16.mxu1 %vm389_vm0, %v4715_v0  ;;  %v816_v0 = vld [vmem:[%s4743_s27 + $0x62] sm:$0xff]  ;;  %v5186_v30 = vpack.c.bf16 %v837_v44, %v836_v39  ;;  %v2802_v44 = vpack.c.bf16 %v2773_v62, %v2772_v37  ;;  %v1165_v1 = vld [vmem:[%s4743_s27 + $0x12a] sm:$0xff] }
  0xab   : > { %v5094_v53 = vpack.c.bf16 %v817_v49, %v816_v0  ;;  %v838_v0 = vld [vmem:[%s4743_s27 + $0x112] sm:$0xff]  ;;  %v839_v49 = vld [vmem:[%s4743_s27 + $0x11a] sm:$0xff] }
  0xaf   : > { %4065 = vmatmul.mubr.msk.bf16.gmra.mrb[4].mxu1 %vm334_vm1, %v5076_v47  ;;  %4233 = vmatmul.mubr.msk.bf16.gmra.mrb[20].mxu0 %vm334_vm1, %v4945_v32  ;;  %v818_v32 = vld [vmem:[%s4743_s27 + $0x72] sm:$0xff] }
  0xb0   : > { %4068 = vmatprep.mubr.msk.bf16.mxu1 %vm334_vm1, %v5078_v14  ;;  %4236 = vmatprep.mubr.msk.bf16.mxu0 %vm334_vm1, %v4961_v43  ;;  %v819_v43 = vld [vmem:[%s4743_s27 + $0x7a] sm:$0xff] }
  0xb1   : > { %v5108_v56 = vpack.c.bf16 %v819_v43, %v818_v32  ;;  %v2448_v32 = vld [vmem:[%s4743_s27 + $0x95] sm:$0xff]  ;;  %v2449_v43 = vld [vmem:[%s4743_s27 + $0x9d] sm:$0xff] }
  0xb7   : > { %4069 = vmatmul.mubr.msk.bf16.gmra.mrb[8].mxu1 %vm334_vm1, %v5092_v51  ;;  %4237 = vmatmul.mubr.msk.bf16.gmra.mrb[24].mxu0 %vm334_vm1, %v4963_v45  ;;  %v822_v45 = vld [vmem:[%s4743_s27 + $0x92] sm:$0xff] }
  0xb8   : > { %4072 = vmatprep.mubr.msk.bf16.mxu1 %vm334_vm1, %v5094_v53  ;;  %4240 = vmatprep.mubr.msk.bf16.mxu0 %vm334_vm1, %v4979_v57  ;;  %v2142_v57 = vld [vmem:[%s4743_s27 + $0x134] sm:$0xff]  ;;  %v5128_v5 = vpack.c.bf16 %v823_v60, %v822_v45  ;;  %v5200_v45 = vpack.c.bf16 %v839_v49, %v838_v0  ;;  %v2477_v60 = vpack.c.bf16 %v2449_v43, %v2448_v32 }
  0xb9   : > { %v2161_v6 = vpack.c.bf16 %v2143_v61, %v2142_v57  ;;  %v2478_v57 = vpack.c.bf16 %v2451_v55, %v2450_v54  ;;  %v2452_v61 = vld [vmem:[%s4743_s27 + $0xb5] sm:$0xff]  ;;  %v1478_v55 = vld [vmem:[%s4743_s27 + $0xc3] sm:$0xff] }
  0xba   : > { %v2777_v0 = vld [vmem:[%s4743_s27 + $0xae] sm:$0xff] }
  0xbf   : > { %4073 = vmatmul.mubr.msk.bf16.gmra.mrb[12].mxu1 %vm334_vm1, %v5108_v56  ;;  %4241 = vmatmul.mubr.msk.bf16.gmra.mrb[28].mxu0 %vm334_vm1, %v4981_v59  ;;  %v2435_v59 = vld [vmem:[%s4743_s27 + $0x2d] sm:$0xff] }
  0xc0   : > { %4076 = vmatprep.mubr.msk.bf16.mxu1 %vm334_vm1, %v5110_v58  ;;  %4244 = vmatprep.mubr.msk.bf16.mxu0 %vm334_vm1, %v4995_v7  ;;  %v2470_v9 = vpack.c.bf16 %v2435_v59, %v2434_v4  ;;  %v826_v7 = vld [vmem:[%s4743_s27 + $0xb2] sm:$0xff]  ;;  %v2479_v59 = vpack.c.bf16 %v2453_v63, %v2452_v61  ;;  %v1481_v63 = vld [vmem:[%s4743_s27 + $0xdb] sm:$0xff] }
  0xc1   : > { %v5146_v27 = vpack.c.bf16 %v827_v10, %v826_v7  ;;  %v2455_v4 = vld [vmem:[%s4743_s27 + $0xcd] sm:$0xff]  ;;  %v2458_v7 = vld [vmem:[%s4743_s27 + $0xe5] sm:$0xff] }
  0xc2   : > { %v2459_v10 = vld [vmem:[%s4743_s27 + $0xed] sm:$0xff] }
  0xc3   : > { %v2482_v13 = vpack.c.bf16 %v2459_v10, %v2458_v7  ;;  %v1480_v61 = vld [vmem:[%s4743_s27 + $0xd3] sm:$0xff]  ;;  %v1482_v7 = vld [vmem:[%s4743_s27 + $0xe3] sm:$0xff]  ;;  %v1483_v10 = vld [vmem:[%s4743_s27 + $0xeb] sm:$0xff] }
  0xc7   : > { %4077 = vmatmul.mubr.msk.bf16.gmra.mrb[16].mxu1 %vm334_vm1, %v5128_v5  ;;  %4245 = vmatmul.mubr.msk.bf16.gmra.mrb[32].mxu0 %vm334_vm1, %v2161_v6  ;;  %v2480_v6 = vpack.c.bf16 %v2455_v4, %v2454_v3  ;;  %v2780_v3 = vld [vmem:[%s4743_s27 + $0xc6] sm:$0xff]  ;;  %v2781_v4 = vld [vmem:[%s4743_s27 + $0xce] sm:$0xff] }
  0xc8   : > { %4080 = vmatprep.mubr.msk.bf16.mxu1 %vm334_vm1, %v5130_v8  ;;  %4250 = vmatprep.mubr.msk.bf16.mxu0 %vm334_vm1, %v2470_v9  ;;  %v2457_v9 = vld [vmem:[%s4743_s27 + $0xdd] sm:$0xff] }
  0xcf   : > { %4081 = vmatmul.mubr.msk.bf16.gmra.mrb[20].mxu1 %vm334_vm1, %v5146_v27  ;;  %4251 = vmatmul.mubr.msk.bf16.vlgmr.msra.gmra.mrb[0].mxu0 %vm334_vm1, %v2471_v29  ;;  %v2467_v29 = vld [vmem:[%s4743_s27 + $0x12d] sm:$0xff] }
  0xd0   : > { %4084 = vmatprep.mubr.msk.bf16.mxu1 %vm334_vm1, %v5148_v20  ;;  %4287 = vmatpush3.bf16.msra.mxu0 %v2871_v22  ;;  %v2486_v22 = vpack.c.bf16 %v2467_v29, %v2466_v23  ;;  %v1486_v23 = vld [vmem:[%s4743_s27 + $0x103] sm:$0xff]  ;;  %v1487_v29 = vld [vmem:[%s4743_s27 + $0x10b] sm:$0xff] }
  0xd1   : > { %4254 = vmatprep.mubr.msk.bf16.mxu0 %vm334_vm1, %v2472_v21 }
  0xd7   : > { %4085 = vmatmul.mubr.msk.bf16.gmra.mrb[24].mxu1 %vm334_vm1, %v5166_v33  ;;  %4255 = vmatmul.mubr.msk.bf16.gmra.mrb[4].mxu0 %vm334_vm1, %v2473_v50  ;;  %v2768_v50 = vld [vmem:[%s4743_s27 + $0x66] sm:$0xff] }
  0xd8   : > { %4088 = vmatprep.mubr.msk.bf16.mxu1 %vm334_vm1, %v5168_v34  ;;  %4258 = vmatprep.mubr.msk.bf16.mxu0 %vm334_vm1, %v2474_v35  ;;  %v2769_v35 = vld [vmem:[%s4743_s27 + $0x6e] sm:$0xff] }
  0xd9   : > { %v2800_v52 = vpack.c.bf16 %v2769_v35, %v2768_v50  ;;  %v1509_v50 = vpack.c.bf16 %v1491_v31, %v1490_v19 }
  0xdf   : > { %4089 = vmatmul.mubr.msk.bf16.gmra.mrb[28].mxu1 %vm334_vm1, %v5184_v16  ;;  %4259 = vmatmul.mubr.msk.bf16.gmra.mrb[8].mxu0 %vm334_vm1, %v2475_v46  ;;  %v1476_v46 = vld [vmem:[%s4743_s27 + $0xb3] sm:$0xff] }
  0xe0   : > { %4092 = vmatprep.mubr.msk.bf16.mxu1 %vm334_vm1, %v5186_v30  ;;  %4262 = vmatprep.mubr.msk.bf16.mxu0 %vm334_vm1, %v2476_v48  ;;  %v1477_v48 = vld [vmem:[%s4743_s27 + $0xbb] sm:$0xff] }
  0xe1   : > { %v1502_v43 = vpack.c.bf16 %v1477_v48, %v1476_v46 }
  0xe7   : > { %4093 = vmatmul.mubr.msk.bf16.gmra.mrb[32].mxu1 %vm334_vm1, %v5200_v45  ;;  %4263 = vmatmul.mubr.msk.bf16.gmra.mrb[12].mxu0 %vm334_vm1, %v2477_v60  ;;  %v2778_v60 = vld [vmem:[%s4743_s27 + $0xb6] sm:$0xff] }
  0xe8   : > { %4098 = vmatprep.mubr.msk.bf16.mxu1 %vm334_vm1, %v5056_v41  ;;  %4266 = vmatprep.mubr.msk.bf16.mxu0 %vm334_vm1, %v2478_v57  ;;  %v2456_v41 = vld [vmem:[%s4743_s27 + $0xd5] sm:$0xff]  ;;  %v2779_v57 = vld [vmem:[%s4743_s27 + $0xbe] sm:$0xff] }
  0xe9   : > { %v2481_v11 = vpack.c.bf16 %v2457_v9, %v2456_v41  ;;  %v1504_v41 = vpack.c.bf16 %v1481_v63, %v1480_v61  ;;  %v2806_v9 = vpack.c.bf16 %v2781_v4, %v2780_v3  ;;  %v5368_v63 = vld [vmem:[%s5449_s2] ss:$0 sm:$0xff] }
  0xef   : > { %4099 = vmatmul.mubr.msk.bf16.vlgmr.msra.gmra.mrb[0].mxu1 %vm334_vm1, %v5058_v42  ;;  %4267 = vmatmul.mubr.msk.bf16.gmra.mrb[16].mxu0 %vm334_vm1, %v2479_v59  ;;  %v2461_v42 = vld [vmem:[%s4743_s27 + $0xfd] sm:$0xff] }
  0xf0   : > { %4102 = vmatprep.mubr.msk.bf16.mxu1 %vm334_vm1, %v5076_v47  ;;  %4270 = vmatprep.mubr.msk.bf16.mxu0 %vm334_vm1, %v2480_v6  ;;  %v2462_v47 = vld [vmem:[%s4743_s27 + $0x105] sm:$0xff]  ;;  %v2805_v6 = vpack.c.bf16 %v2779_v57, %v2778_v60 }
  0xf1   : > { %4325 = vmatpush3.bf16.msra.mxu1 %v4725_v2  ;;  %v2460_v2 = vld [vmem:[%s4743_s27 + $0xf5] sm:$0xff]  ;;  %v2484_v18 = vpack.c.bf16 %v2463_v15, %v2462_v47  ;;  %v2784_v47 = vld [vmem:[%s4743_s27 + $0xe6] sm:$0xff] }
  0xf2   : > { %v2483_v17 = vpack.c.bf16 %v2461_v42, %v2460_v2  ;;  %v1484_v2 = vld [vmem:[%s4743_s27 + $0xf3] sm:$0xff]  ;;  %v1485_v42 = vld [vmem:[%s4743_s27 + $0xfb] sm:$0xff] }
  0xf3   : > { %v2785_v15 = vld [vmem:[%s4743_s27 + $0xee] sm:$0xff] }
  0xf7   : > { %4103 = vmatmul.mubr.msk.bf16.gmra.mrb[4].mxu1 %vm334_vm1, %v5078_v14  ;;  %4271 = vmatmul.mubr.msk.bf16.gmra.mrb[20].mxu0 %vm334_vm1, %v2481_v11  ;;  %v2464_v14 = vld [vmem:[%s4743_s27 + $0x115] sm:$0xff] }
  0xf8   : > { %4106 = vmatprep.mubr.msk.bf16.mxu1 %vm334_vm1, %v5092_v51  ;;  %4274 = vmatprep.mubr.msk.bf16.mxu0 %vm334_vm1, %v2482_v13  ;;  %v2465_v51 = vld [vmem:[%s4743_s27 + $0x11d] sm:$0xff] }
  0xf9   : > { %v2485_v21 = vpack.c.bf16 %v2465_v51, %v2464_v14  ;;  %v2782_v11 = vld [vmem:[%s4743_s27 + $0xd6] sm:$0xff]  ;;  %v2783_v13 = vld [vmem:[%s4743_s27 + $0xde] sm:$0xff]  ;;  %v1506_v14 = vpack.c.bf16 %v1485_v42, %v1484_v2  ;;  %v2808_v51 = vpack.c.bf16 %v2785_v15, %v2784_v47 }
  0xff   : > { %4107 = vmatmul.mubr.msk.bf16.gmra.mrb[8].mxu1 %vm334_vm1, %v5094_v53  ;;  %4275 = vmatmul.mubr.msk.bf16.gmra.mrb[24].mxu0 %vm334_vm1, %v2483_v17  ;;  %v2468_v53 = vld [vmem:[%s4743_s27 + $0x135] sm:$0xff]  ;;  %v1505_v17 = vpack.c.bf16 %v1483_v10, %v1482_v7 }
 0x100   : > { %4110 = vmatprep.mubr.msk.bf16.mxu1 %vm334_vm1, %v5108_v56  ;;  %4278 = vmatprep.mubr.msk.bf16.mxu0 %vm334_vm1, %v2484_v18  ;;  %v2469_v56 = vld [vmem:[%s4743_s27 + $0x13d] sm:$0xff]  ;;  %v2807_v18 = vpack.c.bf16 %v2783_v13, %v2782_v11 }
 0x101   : > { %v2487_v24 = vpack.c.bf16 %v2469_v56, %v2468_v53  ;;  %v1488_v53 = vld [vmem:[%s4743_s27 + $0x113] sm:$0xff]  ;;  %v1489_v56 = vld [vmem:[%s4743_s27 + $0x11b] sm:$0xff] }
 0x107   : > { %4111 = vmatmul.mubr.msk.bf16.gmra.mrb[12].mxu1 %vm334_vm1, %v5110_v58  ;;  %4279 = vmatmul.mubr.msk.bf16.gmra.mrb[28].mxu0 %vm334_vm1, %v2485_v21  ;;  %v2762_v58 = vld [vmem:[%s4743_s27 + $0x36] sm:$0xff] }
 0x108   : > { %4114 = vmatprep.mubr.msk.bf16.mxu1 %vm334_vm1, %v5128_v5  ;;  %4282 = vmatprep.mubr.msk.bf16.mxu0 %vm334_vm1, %v2486_v22  ;;  %v2763_v5 = vld [vmem:[%s4743_s27 + $0x3e] sm:$0xff]  ;;  %v2786_v21 = vld [vmem:[%s4743_s27 + $0xf6] sm:$0xff] }
 0x109   : > { %v2797_v26 = vpack.c.bf16 %v2763_v5, %v2762_v58  ;;  %v2787_v22 = vld [vmem:[%s4743_s27 + $0xfe] sm:$0xff]  ;;  %v1508_v58 = vpack.c.bf16 %v1489_v56, %v1488_v53  ;;  %v2810_v5 = vpack.c.bf16 %v2789_v38, %v2788_v25 }
 0x10f   : > { %4115 = vmatmul.mubr.msk.bf16.gmra.mrb[16].mxu1 %vm334_vm1, %v5130_v8  ;;  %4283 = vmatmul.mubr.msk.bf16.gmra.mrb[32].mxu0 %vm334_vm1, %v2487_v24  ;;  %v2766_v8 = vld [vmem:[%s4743_s27 + $0x56] sm:$0xff]  ;;  %v1507_v24 = vpack.c.bf16 %v1487_v29, %v1486_v23 }
 0x110   : > { %4118 = vmatprep.mubr.msk.bf16.mxu1 %vm334_vm1, %v5146_v27  ;;  %4288 = vmatprep.mubr.msk.bf16.mxu0 %vm334_vm1, %v2796_v28  ;;  %v2767_v27 = vld [vmem:[%s4743_s27 + $0x5e] sm:$0xff]  ;;  %v2809_v28 = vpack.c.bf16 %v2787_v22, %v2786_v21 }
 0x111   : > { %v2799_v36 = vpack.c.bf16 %v2767_v27, %v2766_v8  ;;  %v2792_v8 = vld [vmem:[%s4743_s27 + $0x126] sm:$0xff]  ;;  %v2793_v27 = vld [vmem:[%s4743_s27 + $0x12e] sm:$0xff] }
 0x117   : > { %4119 = vmatmul.mubr.msk.bf16.gmra.mrb[20].mxu1 %vm334_vm1, %v5148_v20  ;;  %4289 = vmatmul.mubr.msk.bf16.vlgmr.msra.gmra.mrb[0].mxu0 %vm334_vm1, %v2797_v26  ;;  %v2770_v20 = vld [vmem:[%s4743_s27 + $0x76] sm:$0xff] }
 0x118   : > { %4122 = vmatprep.mubr.msk.bf16.mxu1 %vm334_vm1, %v5166_v33  ;;  %4292 = vmatprep.mubr.msk.bf16.mxu0 %vm334_vm1, %v2798_v40  ;;  %v2771_v33 = vld [vmem:[%s4743_s27 + $0x7e] sm:$0xff]  ;;  %v2790_v26 = vld [vmem:[%s4743_s27 + $0x116] sm:$0xff] }
 0x119   : > { %v2801_v39 = vpack.c.bf16 %v2771_v33, %v2770_v20  ;;  %v2791_v40 = vld [vmem:[%s4743_s27 + $0x11e] sm:$0xff] }
 0x11a   : > { %v2811_v35 = vpack.c.bf16 %v2791_v40, %v2790_v26  ;;  %v2795_v20 = vld [vmem:[%s4743_s27 + $0x13e] sm:$0xff] }
 0x11f   : > { %4123 = vmatmul.mubr.msk.bf16.gmra.mrb[24].mxu1 %vm334_vm1, %v5168_v34  ;;  %4293 = vmatmul.mubr.msk.bf16.gmra.mrb[4].mxu0 %vm334_vm1, %v2799_v36  ;;  %v1164_v34 = vld [vmem:[%s4743_s27 + $0x122] sm:$0xff]  ;;  %v2812_v36 = vpack.c.bf16 %v2793_v27, %v2792_v8 }
 0x120   : > { %4126 = vmatprep.mubr.msk.bf16.mxu1 %vm334_vm1, %v5184_v16  ;;  %4296 = vmatprep.mubr.msk.bf16.mxu0 %vm334_vm1, %v2800_v52  ;;  %v2775_v16 = vld [vmem:[%s4743_s27 + $0x9e] sm:$0xff]  ;;  %v1183_v49 = vpack.c.bf16 %v1165_v1, %v1164_v34  ;;  %v2794_v52 = vld [vmem:[%s4743_s27 + $0x136] sm:$0xff] }
 0x121   : > { %v2803_v32 = vpack.c.bf16 %v2775_v16, %v2774_v12  ;;  %v2813_v33 = vpack.c.bf16 %v2795_v20, %v2794_v52 }
 0x127   : > { %4127 = vmatmul.mubr.msk.bf16.gmra.mrb[28].mxu1 %vm334_vm1, %v5186_v30  ;;  %4297 = vmatmul.mubr.msk.bf16.gmra.mrb[8].mxu0 %vm334_vm1, %v2801_v39  ;;  %v2776_v30 = vld [vmem:[%s4743_s27 + $0xa6] sm:$0xff] }
 0x128   : > { %4130 = vmatprep.mubr.msk.bf16.mxu1 %vm334_vm1, %v5200_v45  ;;  %4300 = vmatprep.mubr.msk.bf16.mxu0 %vm334_vm1, %v2802_v44  ;;  %v2804_v54 = vpack.c.bf16 %v2777_v0, %v2776_v30  ;;  %v1479_v45 = vld [vmem:[%s4743_s27 + $0xcb] sm:$0xff] }
 0x129   : > { %v1503_v59 = vpack.c.bf16 %v1479_v45, %v1478_v55 }
 0x12f   : > { %4131 = vmatmul.mubr.msk.bf16.gmra.mrb[32].mxu1 %vm334_vm1, %v1183_v49  ;;  %4301 = vmatmul.mubr.msk.bf16.gmra.mrb[12].mxu0 %vm334_vm1, %v2803_v32 }
 0x130   : > { %4156 = vmatprep.mubr.msk.bf16.mxu1 %vm334_vm1, %v1502_v43  ;;  %4304 = vmatprep.mubr.msk.bf16.mxu0 %vm334_vm1, %v2804_v54 }
 0x137   : > { %4157 = vmatmul.mubr.msk.bf16.vlgmr.msra.gmra.mrb[20].mxu1 %vm334_vm1, %v1503_v59  ;;  %4305 = vmatmul.mubr.msk.bf16.gmra.mrb[16].mxu0 %vm334_vm1, %v2805_v6 }
 0x138   : > { %4160 = vmatprep.mubr.msk.bf16.mxu1 %vm334_vm1, %v1504_v41  ;;  %4308 = vmatprep.mubr.msk.bf16.mxu0 %vm334_vm1, %v2806_v9 }
 0x13f   : > { %4161 = vmatmul.mubr.msk.bf16.gmra.mrb[24].mxu1 %vm334_vm1, %v1505_v17  ;;  %4309 = vmatmul.mubr.msk.bf16.gmra.mrb[20].mxu0 %vm334_vm1, %v2807_v18 }
 0x140   : > { %4164 = vmatprep.mubr.msk.bf16.mxu1 %vm334_vm1, %v1506_v14  ;;  %4312 = vmatprep.mubr.msk.bf16.mxu0 %vm334_vm1, %v2808_v51 }
 0x147   : > { %4165 = vmatmul.mubr.msk.bf16.gmra.mrb[28].mxu1 %vm334_vm1, %v1507_v24  ;;  %4313 = vmatmul.mubr.msk.bf16.gmra.mrb[24].mxu0 %vm334_vm1, %v2809_v28 }
 0x148   : > { %4168 = vmatprep.mubr.msk.bf16.mxu1 %vm334_vm1, %v1508_v58  ;;  %4316 = vmatprep.mubr.msk.bf16.mxu0 %vm334_vm1, %v2810_v5 }
 0x14f   : > { %4169 = vmatmul.mubr.msk.bf16.gmra.mrb[32].mxu1 %vm334_vm1, %v1509_v50  ;;  %4317 = vmatmul.mubr.msk.bf16.gmra.mrb[28].mxu0 %vm334_vm1, %v2811_v35 }
 0x150   : > { %4320 = vmatprep.mubr.msk.bf16.mxu0 %vm334_vm1, %v2812_v36 }
 0x157   : > { %4321 = vmatmul.mubr.msk.bf16.gmra.mrb[32].mxu0 %vm334_vm1, %v2813_v33 }
 0x1c2   : > { %v4100_v37 = vpop.f32.mrb[0].mxu1 }
 0x1c3   : > { %v1277_v62 = vpop.f32.mrb[1].mxu1 }
 0x1c4   : > { %v4101_v39 = vpop.f32.mrb[2].mxu1 }
 0x1c5   : > { %v1280_v44 = vpop.f32.mrb[3].mxu1 }
 0x1ca   : > { %v4104_v34 = vpop.f32.mrb[4].mxu1 }
 0x1cb   : > { %v1293_v1 = vpop.f32.mrb[5].mxu1 }
 0x1cc   : > { %v4105_v12 = vpop.f32.mrb[6].mxu1 }
 0x1cd   : > { %v1296_v16 = vpop.f32.mrb[7].mxu1 }
 0x1d2   : > { %v4108_v46 = vpop.f32.mrb[8].mxu1 }
 0x1d3   : > { %v1309_v48 = vpop.f32.mrb[9].mxu1 }
 0x1d4   : > { %v4109_v30 = vpop.f32.mrb[10].mxu1 }
 0x1d5   : > { %v1312_v0 = vpop.f32.mrb[11].mxu1 }
 0x1da   : > { %v5349_v49 = vpop.f32.mrb[12].mxu1 }
 0x1db   : > { %v5351_v32 = vpop.f32.mrb[13].mxu1 }
 0x1dc   : > { %v5353_v43 = vpop.f32.mrb[14].mxu1 }
 0x1dd   : > { %v5355_v54 = vpop.f32.mrb[15].mxu1 }
 0x1e2   : > { %v5357_v55 = vpop.f32.mrb[16].mxu1 }
 0x1e3   : > { %v5359_v45 = vpop.f32.mrb[17].mxu1 }
 0x1e4   : > { %v5361_v60 = vpop.f32.mrb[18].mxu1 }
 0x1e5   : > { %v5363_v57 = vpop.f32.mrb[19].mxu1 }
 0x1ea   : > { %v4290_v61 = vpop.f32.mrb[0].mxu0 }
 0x1eb   : > { %v4326_v3 = vadd.f32 %v4290_v61, %v4100_v37  ;;  %v2907_v4 = vpop.f32.mrb[1].mxu0 }
 0x1ec   : > { %v4327_v59 = vadd.f32 %v2907_v4, %v1277_v62  ;;  %v4291_v6 = vpop.f32.mrb[2].mxu0 }
 0x1ed   : > { %v3095_v41 = vadd.f32 %v4326_v3, %v5368_v63  ;;  %v4328_v9 = vadd.f32 %v4291_v6, %v4101_v39  ;;  %v2910_v7 = vpop.f32.mrb[3].mxu0 }
 0x1ee   : > { %v3093_v10 = vadd.f32 %v4327_v59, %v5368_v63  ;;  %v4329_v11 = vadd.f32 %v2910_v7, %v1280_v44 }
 0x1ef   : > { %v3096_v13 = vadd.f32 %v4328_v9, %v5368_v63  ;;  %v3131_v42 = vmax.f32 %v3095_v41, 0.0 }
 0x1f0   : > { %v3094_v2 = vadd.f32 %v4329_v11, %v5368_v63  ;;  %v3129_v15 = vmax.f32 %v3093_v10, 0.0 }
 0x1f1   : > { %v3132_v47 = vmax.f32 %v3096_v13, 0.0 }
 0x1f2   : > { %v3130_v17 = vmax.f32 %v3094_v2, 0.0  ;;  %v4294_v18 = vpop.f32.mrb[4].mxu0 }
 0x1f3   : > { %v3712_v14 = vpack.c.bf16 %v3132_v47, %v3131_v42  ;;  %v4330_v51 = vadd.f32 %v4294_v18, %v4104_v34  ;;  %v2923_v23 = vpop.f32.mrb[5].mxu0 }
 0x1f4   : > { %v3707_v29 = vpack.c.bf16 %v3130_v17, %v3129_v15  ;;  %v4331_v21 = vadd.f32 %v2923_v23, %v1293_v1  ;;  %v4295_v22 = vpop.f32.mrb[6].mxu0 }
 0x1f5   : > { %3794 = vst [vmem:[%s5378_s20 + $0x8] sm:$0xff] %v3712_v14   ;;  %v3099_v53 = vadd.f32 %v4330_v51, %v5368_v63  ;;  %v4332_v56 = vadd.f32 %v4295_v22, %v4105_v12  ;;  %v2926_v25 = vpop.f32.mrb[7].mxu0 }
 0x1f6   : > { %3708 = vst [vmem:[%s5378_s20] sm:$0xff] %v3707_v29   ;;  %v3097_v38 = vadd.f32 %v4331_v21, %v5368_v63  ;;  %v4333_v24 = vadd.f32 %v2926_v25, %v1296_v16 }
 0x1f7   : > { %v3100_v28 = vadd.f32 %v4332_v56, %v5368_v63  ;;  %v3135_v5 = vmax.f32 %v3099_v53, 0.0 }
 0x1f8   : > { %v3098_v58 = vadd.f32 %v4333_v24, %v5368_v63  ;;  %v3133_v31 = vmax.f32 %v3097_v38, 0.0 }
 0x1f9   : > { %v3136_v19 = vmax.f32 %v3100_v28, 0.0 }
 0x1fa   : > { %v3134_v26 = vmax.f32 %v3098_v58, 0.0  ;;  %v4298_v40 = vpop.f32.mrb[8].mxu0 }
 0x1fb   : > { %v3722_v8 = vpack.c.bf16 %v3136_v19, %v3135_v5  ;;  %v4334_v27 = vadd.f32 %v4298_v40, %v4108_v46  ;;  %v2939_v50 = vpop.f32.mrb[9].mxu0 }
 0x1fc   : > { %v3717_v35 = vpack.c.bf16 %v3134_v26, %v3133_v31  ;;  %v4335_v36 = vadd.f32 %v2939_v50, %v1309_v48  ;;  %v4299_v52 = vpop.f32.mrb[10].mxu0 }
 0x1fd   : > { %3796 = vst [vmem:[%s5378_s20 + $0x18] sm:$0xff] %v3722_v8   ;;  %v3103_v20 = vadd.f32 %v4334_v27, %v5368_v63  ;;  %v4336_v33 = vadd.f32 %v4299_v52, %v4109_v30  ;;  %v2942_v37 = vpop.f32.mrb[11].mxu0 }
 0x1fe   : > { %3795 = vst [vmem:[%s5378_s20 + $0x10] sm:$0xff] %v3717_v35   ;;  %v3101_v62 = vadd.f32 %v4335_v36, %v5368_v63  ;;  %v4337_v39 = vadd.f32 %v2942_v37, %v1312_v0 }
 0x1ff   : > { %v3104_v44 = vadd.f32 %v4336_v33, %v5368_v63  ;;  %v3139_v1 = vmax.f32 %v3103_v20, 0.0 }
 0x200   : > { %v3102_v34 = vadd.f32 %v4337_v39, %v5368_v63  ;;  %v3137_v16 = vmax.f32 %v3101_v62, 0.0 }
 0x201   : > { %v3140_v12 = vmax.f32 %v3104_v44, 0.0 }
 0x202   : > { %v3138_v46 = vmax.f32 %v3102_v34, 0.0  ;;  %v4302_v48 = vpop.f32.mrb[12].mxu0 }
 0x203   : > { %v3732_v61 = vpack.c.bf16 %v3140_v12, %v3139_v1  ;;  %v4338_v3 = vadd.f32 %v4302_v48, %v5349_v49  ;;  %v2955_v30 = vpop.f32.mrb[13].mxu0 }
 0x204   : > { %v3727_v4 = vpack.c.bf16 %v3138_v46, %v3137_v16  ;;  %v4339_v59 = vadd.f32 %v2955_v30, %v5351_v32  ;;  %v4303_v6 = vpop.f32.mrb[14].mxu0 }
 0x205   : > { %3798 = vst [vmem:[%s5378_s20 + $0x28] sm:$0xff] %v3732_v61   ;;  %v3107_v0 = vadd.f32 %v4338_v3, %v5368_v63  ;;  %v4340_v41 = vadd.f32 %v4303_v6, %v5353_v43  ;;  %v2958_v9 = vpop.f32.mrb[15].mxu0 }
 0x206   : > { %3797 = vst [vmem:[%s5378_s20 + $0x20] sm:$0xff] %v3727_v4   ;;  %v3105_v7 = vadd.f32 %v4339_v59, %v5368_v63  ;;  %v4341_v10 = vadd.f32 %v2958_v9, %v5355_v54 }
 0x207   : > { %v3108_v11 = vadd.f32 %v4340_v41, %v5368_v63  ;;  %v3143_v13 = vmax.f32 %v3107_v0, 0.0 }
 0x208   : > { %v3106_v49 = vadd.f32 %v4341_v10, %v5368_v63  ;;  %v3141_v42 = vmax.f32 %v3105_v7, 0.0 }
 0x209   : > { %v3144_v2 = vmax.f32 %v3108_v11, 0.0 }
 0x20a   : > { %v4158_v32 = vpop.f32.mrb[20].mxu1  ;;  %v3142_v47 = vmax.f32 %v3106_v49, 0.0  ;;  %v4306_v15 = vpop.f32.mrb[16].mxu0 }
 0x20b   : > { %v1683_v17 = vpop.f32.mrb[21].mxu1  ;;  %v3742_v43 = vpack.c.bf16 %v3144_v2, %v3143_v13  ;;  %v4342_v18 = vadd.f32 %v4306_v15, %v5357_v55  ;;  %v2971_v14 = vpop.f32.mrb[17].mxu0 }
 0x20c   : > { %v4159_v51 = vpop.f32.mrb[22].mxu1  ;;  %v3737_v23 = vpack.c.bf16 %v3142_v47, %v3141_v42  ;;  %v4343_v54 = vadd.f32 %v2971_v14, %v5359_v45  ;;  %v4307_v29 = vpop.f32.mrb[18].mxu0 }
 0x20d   : > { %v1686_v21 = vpop.f32.mrb[23].mxu1  ;;  %3800 = vst [vmem:[%s5378_s20 + $0x38] sm:$0xff] %v3742_v43   ;;  %v3111_v22 = vadd.f32 %v4342_v18, %v5368_v63  ;;  %v4344_v53 = vadd.f32 %v4307_v29, %v5361_v60  ;;  %v2974_v56 = vpop.f32.mrb[19].mxu0 }
 0x20e   : > { %3799 = vst [vmem:[%s5378_s20 + $0x30] sm:$0xff] %v3737_v23   ;;  %v3109_v25 = vadd.f32 %v4343_v54, %v5368_v63  ;;  %v4345_v38 = vadd.f32 %v2974_v56, %v5363_v57 }
 0x20f   : > { %v3112_v55 = vadd.f32 %v4344_v53, %v5368_v63  ;;  %v3147_v28 = vmax.f32 %v3111_v22, 0.0 }
 0x210   : > { %v3110_v24 = vadd.f32 %v4345_v38, %v5368_v63  ;;  %v3145_v5 = vmax.f32 %v3109_v25, 0.0 }
 0x211   : > { %v3148_v45 = vmax.f32 %v3112_v55, 0.0 }
 0x212   : > { %v4162_v58 = vpop.f32.mrb[24].mxu1  ;;  %v3146_v19 = vmax.f32 %v3110_v24, 0.0  ;;  %v4310_v31 = vpop.f32.mrb[20].mxu0 }
 0x213   : > { %v1699_v26 = vpop.f32.mrb[25].mxu1  ;;  %v3752_v60 = vpack.c.bf16 %v3148_v45, %v3147_v28  ;;  %v4346_v40 = vadd.f32 %v4310_v31, %v4158_v32  ;;  %v2987_v8 = vpop.f32.mrb[21].mxu0 }
 0x214   : > { %v4163_v27 = vpop.f32.mrb[26].mxu1  ;;  %v3747_v50 = vpack.c.bf16 %v3146_v19, %v3145_v5  ;;  %v4347_v35 = vadd.f32 %v2987_v8, %v1683_v17  ;;  %v4311_v57 = vpop.f32.mrb[22].mxu0 }
 0x215   : > { %v1702_v36 = vpop.f32.mrb[27].mxu1  ;;  %3802 = vst [vmem:[%s5378_s20 + $0x48] sm:$0xff] %v3752_v60   ;;  %v3115_v52 = vadd.f32 %v4346_v40, %v5368_v63  ;;  %v4348_v20 = vadd.f32 %v4311_v57, %v4159_v51  ;;  %v2990_v33 = vpop.f32.mrb[23].mxu0 }
 0x216   : > { %3801 = vst [vmem:[%s5378_s20 + $0x40] sm:$0xff] %v3747_v50   ;;  %v3113_v37 = vadd.f32 %v4347_v35, %v5368_v63  ;;  %v4349_v62 = vadd.f32 %v2990_v33, %v1686_v21 }
 0x217   : > { %v3116_v39 = vadd.f32 %v4348_v20, %v5368_v63  ;;  %v3151_v34 = vmax.f32 %v3115_v52, 0.0 }
 0x218   : > { %v3114_v44 = vadd.f32 %v4349_v62, %v5368_v63  ;;  %v3149_v16 = vmax.f32 %v3113_v37, 0.0 }
 0x219   : > { %v3152_v1 = vmax.f32 %v3116_v39, 0.0 }
 0x21a   : > { %v4166_v12 = vpop.f32.mrb[28].mxu1  ;;  %v3150_v46 = vmax.f32 %v3114_v44, 0.0  ;;  %v4314_v48 = vpop.f32.mrb[24].mxu0 }
 0x21b   : > { %v1715_v61 = vpop.f32.mrb[29].mxu1  ;;  %v3762_v3 = vpack.c.bf16 %v3152_v1, %v3151_v34  ;;  %v4350_v30 = vadd.f32 %v4314_v48, %v4162_v58  ;;  %v3003_v4 = vpop.f32.mrb[25].mxu0 }
 0x21c   : > { %v4167_v59 = vpop.f32.mrb[30].mxu1  ;;  %v3757_v6 = vpack.c.bf16 %v3150_v46, %v3149_v16  ;;  %v4351_v0 = vadd.f32 %v3003_v4, %v1699_v26  ;;  %v4315_v41 = vpop.f32.mrb[26].mxu0 }
 0x21d   : > { %v1718_v9 = vpop.f32.mrb[31].mxu1  ;;  %3804 = vst [vmem:[%s5378_s20 + $0x58] sm:$0xff] %v3762_v3   ;;  %v3119_v7 = vadd.f32 %v4350_v30, %v5368_v63  ;;  %v4352_v10 = vadd.f32 %v4315_v41, %v4163_v27  ;;  %v3006_v11 = vpop.f32.mrb[27].mxu0 }
 0x21e   : > { %3803 = vst [vmem:[%s5378_s20 + $0x50] sm:$0xff] %v3757_v6   ;;  %v3117_v49 = vadd.f32 %v4351_v0, %v5368_v63  ;;  %v4353_v13 = vadd.f32 %v3006_v11, %v1702_v36 }
 0x21f   : > { %v3120_v2 = vadd.f32 %v4352_v10, %v5368_v63  ;;  %v3155_v42 = vmax.f32 %v3119_v7, 0.0 }
 0x220   : > { %v3118_v32 = vadd.f32 %v4353_v13, %v5368_v63  ;;  %v3153_v17 = vmax.f32 %v3117_v49, 0.0 }
 0x221   : > { %v3156_v47 = vmax.f32 %v3120_v2, 0.0 }
 0x222   : > { %v4170_v15 = vpop.f32.mrb[32].mxu1  ;;  %v3154_v43 = vmax.f32 %v3118_v32, 0.0  ;;  %v4318_v18 = vpop.f32.mrb[28].mxu0 }
 0x223   : > { %v1731_v14 = vpop.f32.mrb[33].mxu1  ;;  %v3772_v51 = vpack.c.bf16 %v3156_v47, %v3155_v42  ;;  %v4354_v23 = vadd.f32 %v4318_v18, %v4166_v12  ;;  %v3019_v54 = vpop.f32.mrb[29].mxu0 }
 0x224   : > { %v4171_v29 = vpop.f32.mrb[34].mxu1  ;;  %v3767_v21 = vpack.c.bf16 %v3154_v43, %v3153_v17  ;;  %v4355_v22 = vadd.f32 %v3019_v54, %v1715_v61  ;;  %v4319_v53 = vpop.f32.mrb[30].mxu0 }
 0x225   : > { %v1734_v56 = vpop.f32.mrb[35].mxu1  ;;  %3806 = vst [vmem:[%s5378_s20 + $0x68] sm:$0xff] %v3772_v51   ;;  %v3123_v25 = vadd.f32 %v4354_v23, %v5368_v63  ;;  %v4356_v38 = vadd.f32 %v4319_v53, %v4167_v59  ;;  %v3022_v55 = vpop.f32.mrb[31].mxu0 }
 0x226   : > { %3805 = vst [vmem:[%s5378_s20 + $0x60] sm:$0xff] %v3767_v21   ;;  %v3121_v24 = vadd.f32 %v4355_v22, %v5368_v63  ;;  %v4357_v28 = vadd.f32 %v3022_v55, %v1718_v9 }
 0x227   : > { %v3124_v45 = vadd.f32 %v4356_v38, %v5368_v63  ;;  %v3159_v5 = vmax.f32 %v3123_v25, 0.0 }
 0x228   : > { %v3122_v58 = vadd.f32 %v4357_v28, %v5368_v63  ;;  %v3157_v31 = vmax.f32 %v3121_v24, 0.0 }
 0x229   : > { %v3160_v19 = vmax.f32 %v3124_v45, 0.0 }
 0x22a   : > { %v3158_v26 = vmax.f32 %v3122_v58, 0.0  ;;  %v4322_v60 = vpop.f32.mrb[32].mxu0 }
 0x22b   : > { %v3782_v40 = vpack.c.bf16 %v3160_v19, %v3159_v5  ;;  %v4358_v8 = vadd.f32 %v4322_v60, %v4170_v15  ;;  %v3035_v27 = vpop.f32.mrb[33].mxu0 }
 0x22c   : > { %v3777_v50 = vpack.c.bf16 %v3158_v26, %v3157_v31  ;;  %v4359_v35 = vadd.f32 %v3035_v27, %v1731_v14  ;;  %v4323_v57 = vpop.f32.mrb[34].mxu0 }
 0x22d   : > { %3808 = vst [vmem:[%s5378_s20 + $0x78] sm:$0xff] %v3782_v40   ;;  %v3127_v36 = vadd.f32 %v4358_v8, %v5368_v63  ;;  %v4360_v52 = vadd.f32 %v4323_v57, %v4171_v29  ;;  %v3038_v20 = vpop.f32.mrb[35].mxu0 }
 0x22e   : > { %3807 = vst [vmem:[%s5378_s20 + $0x70] sm:$0xff] %v3777_v50   ;;  %v3125_v33 = vadd.f32 %v4359_v35, %v5368_v63  ;;  %v4361_v37 = vadd.f32 %v3038_v20, %v1734_v56 }
 0x22f   : > { %v3128_v62 = vadd.f32 %v4360_v52, %v5368_v63  ;;  %v3163_v44 = vmax.f32 %v3127_v36, 0.0 }
 0x230   : > { %v3126_v39 = vadd.f32 %v4361_v37, %v5368_v63  ;;  %v3161_v1 = vmax.f32 %v3125_v33, 0.0 }
 0x231   : > { %v3164_v34 = vmax.f32 %v3128_v62, 0.0 }
 0x232   : > { %v3162_v12 = vmax.f32 %v3126_v39, 0.0 }
 0x233   : > { %v3792_v16 = vpack.c.bf16 %v3164_v34, %v3163_v44 }
 0x234   : > { %v3787_v46 = vpack.c.bf16 %v3162_v12, %v3161_v1 }
 0x235   : > { %3810 = vst [vmem:[%s5378_s20 + $0x88] sm:$0xff] %v3792_v16  }
 0x236   : > { %3809 = vst [vmem:[%s5378_s20 + $0x80] sm:$0xff] %v3787_v46  }
 0x237 PF: > { %s13_s14 = sadd.s32 1, %s4672_s14   ;;  %s5451_s12 = smov %s4668_s13 }
 0x238   : > { %p10_p5 = scmp.ge.s32.totalorder %s13_s14, 4   ;;  %s5452_s13 = smov %s5454_s15 }
 0x23a   :  { %12 = sbr.rel (!%p10_p5) target bundleno = 2 (0x2), region = 76 }

</bundles_post_ra>
